<compile_context>
chip_gen: v5e
topology: v5e:2x2
jax: 0.10.0
libtpu: 0.0.40
codegen_flags: <defaults>
</compile_context>

<pallas_src>
import jax
import jax.numpy as jnp
from jax.experimental import pallas as pl
from jax.experimental.pallas import tpu as pltpu


H1 = 512
H2 = 256
OUT = 1
OUT_LANES = 128          # lane-dense output slab; wrapper slices [:, :1]
LEAK = 0.2


def _mlp_kernel(x_ref, w1_ref, b1_ref, w2_ref, b2_ref, w3_ref, b3_ref,
                o_ref, acc_ref):
    """Grid = (B tiles, K tiles). Layer-1 partial matmul every step; layers 2/3
    run once per B-tile in the K-finalize branch."""
    ki = pl.program_id(1)

    @pl.when(ki == 0)
    def _():
        acc_ref[...] = jnp.zeros_like(acc_ref)

    # --- Layer 1 partial product: (bm, tk) @ (tk, H1) on the MXU, f32 acc ---
    acc_ref[...] += jnp.dot(x_ref[...], w1_ref[...],
                            preferred_element_type=jnp.float32)

    @pl.when(ki == pl.num_programs(1) - 1)
    def _():
        # Bias + LeakyReLU(0.2); write back into the accumulator (explicit VMEM
        # staging so h1 need not live in vregs across the layer-2 matmul).
        h1 = acc_ref[...] + b1_ref[...]
        acc_ref[...] = jnp.where(h1 > 0, h1, LEAK * h1)

        # --- Layer 2: (bm, H1) @ (H1, H2) on the MXU, f32 accumulation ---
        h2 = jnp.dot(acc_ref[...].astype(w2_ref.dtype), w2_ref[...],
                     preferred_element_type=jnp.float32)
        h2 = h2 + b2_ref[...]
        h2 = jnp.where(h2 > 0, h2, LEAK * h2)

        # --- Layer 3 (H2 -> 1): VPU multiply + lane reduction; broadcast the
        #     scalar across 128 lanes so the store is a full, unmasked vst ---
        o = jnp.sum(h2 * w3_ref[...], axis=-1, keepdims=True) + b3_ref[...]
        o_ref[...] = jnp.broadcast_to(o, o_ref.shape).astype(o_ref.dtype)


def _round_up(x, m):
    return ((x + m - 1) // m) * m


def prepare_params(params, *, compute_dtype=jnp.bfloat16):
    """One-time parameter conversion (hoisted out of the per-call hot path).

    Pads w1's feature dim to a multiple of 128, casts the matmul weights to
    bf16 and keeps biases / the final 1-wide row in f32 (v5e-safe).
    """
    # TODO(synk): on v7x, optionally store w1 as fp8 (e4m3) with a per-column
    # scale folded into the finalize for another ~2x cut of the binding HBM
    # traffic (gate behind an accuracy check).
    D = params["w1"].shape[0]
    D_pad = _round_up(D, 128)
    w1 = jnp.zeros((D_pad, H1), compute_dtype).at[:D, :].set(
        params["w1"].astype(compute_dtype))
    return {
        "D": D,
        "D_pad": D_pad,
        "compute_dtype": compute_dtype,
        "w1": w1,                                        # (D_pad, H1) bf16
        "b1": params["b1"].astype(jnp.float32),          # (1, H1)
        "w2": params["w2"].astype(compute_dtype),        # (H1, H2) bf16
        "b2": params["b2"].astype(jnp.float32),          # (1, H2)
        "w3_row": params["w3"].astype(jnp.float32).T,    # (1, H2)
        "b3": params["b3"].astype(jnp.float32),          # (1, 1)
    }


def _pick_tk(D_pad):
    """Largest K-tile (<= 2048) that divides D_pad; D_pad is a multiple of 128."""
    if D_pad <= 2048:
        return D_pad
    for cand in (2048, 1024, 512, 256):
        if D_pad % cand == 0:
            return cand
    return 128


def _pick_batch_tiling(B):
    """bm is a multiple of 16 (bf16 sublane packing), <= 512 rows, and the
    batch is split into >= 2 B-tiles whenever possible (v7x megacore)."""
    if B <= 16:
        bm = _round_up(B, 16)
        return bm, bm
    if B <= 1024:
        B_pad = _round_up(B, 32)
        return B_pad // 2, B_pad
    bm = 512
    return bm, _round_up(B, bm)


def style_discriminator_forward(x_nchw, prep):
    """x_nchw: (B, C, H, W). prep: output of prepare_params()."""
    B = x_nchw.shape[0]
    x2d = x_nchw.reshape(B, -1)              # matches torch input.view(B, -1)
    D = x2d.shape[1]
    assert D == prep["D"], (D, prep["D"])

    D_pad = prep["D_pad"]
    cd = prep["compute_dtype"]
    tk = _pick_tk(D_pad)
    bm, B_pad = _pick_batch_tiling(B)

    x_p = jnp.zeros((B_pad, D_pad), cd).at[:B, :D].set(x2d.astype(cd))

    grid = (B_pad // bm, D_pad // tk)

    out = pl.pallas_call(
        _mlp_kernel,
        out_shape=jax.ShapeDtypeStruct((B_pad, OUT_LANES), jnp.float32),
        grid_spec=pltpu.PrefetchScalarGridSpec(
            num_scalar_prefetch=0,
            grid=grid,
            in_specs=[
                pl.BlockSpec((bm, tk), lambda bi, ki: (bi, ki)),   # x
                pl.BlockSpec((tk, H1), lambda bi, ki: (ki, 0)),    # w1
                pl.BlockSpec((1, H1), lambda bi, ki: (0, 0)),      # b1
                pl.BlockSpec((H1, H2), lambda bi, ki: (0, 0)),     # w2
                pl.BlockSpec((1, H2), lambda bi, ki: (0, 0)),      # b2
                pl.BlockSpec((1, H2), lambda bi, ki: (0, 0)),      # w3 (row)
                pl.BlockSpec((1, OUT), lambda bi, ki: (0, 0)),     # b3
            ],
            out_specs=pl.BlockSpec((bm, OUT_LANES), lambda bi, ki: (bi, 0)),
            scratch_shapes=[pltpu.VMEM((bm, H1), jnp.float32)],
        ),
        compiler_params=pltpu.CompilerParams(
            dimension_semantics=("parallel", "arbitrary")),
    )(x_p, prep["w1"], prep["b1"], prep["w2"], prep["b2"], prep["w3_row"],
      prep["b3"])

    return out[:B, :OUT]


def init_params(key, input_dim):
    """Deterministic init mimicking torch.nn.Linear default
    (U[-1/sqrt(fan_in), +1/sqrt(fan_in)]). Weights stored as (in, out)."""
    ks = jax.random.split(key, 6)

    def lin(kw, kb, fan_in, fan_out):
        bound = 1.0 / jnp.sqrt(fan_in)
        w = jax.random.uniform(kw, (fan_in, fan_out), jnp.float32, -bound, bound)
        b = jax.random.uniform(kb, (1, fan_out), jnp.float32, -bound, bound)
        return w, b

    w1, b1 = lin(ks[0], ks[1], input_dim, H1)
    w2, b2 = lin(ks[2], ks[3], H1, H2)
    w3, b3 = lin(ks[4], ks[5], H2, OUT)
    return {"w1": w1, "b1": b1, "w2": w2, "b2": b2, "w3": w3, "b3": b3}


def _reference_forward(x_nchw, params, compute_dtype=jnp.float32):
    """Pure-JAX reference of the same MLP (optionally with bf16 matmul inputs
    and f32 accumulation to match the kernel's compute dtype)."""
    x = x_nchw.reshape(x_nchw.shape[0], -1).astype(compute_dtype)
    w1 = params["w1"].astype(compute_dtype)
    w2 = params["w2"].astype(compute_dtype)
    h = jnp.dot(x, w1, preferred_element_type=jnp.float32) + params["b1"]
    h = jnp.where(h > 0, h, LEAK * h)
    h = jnp.dot(h.astype(compute_dtype), w2,
                preferred_element_type=jnp.float32) + params["b2"]
    h = jnp.where(h > 0, h, LEAK * h)
    return h @ params["w3"] + params["b3"]


if __name__ == "__main__":
    key = jax.random.PRNGKey(0)
    k_x, k_p = jax.random.split(key)

    # Small NCHW input consistent with input.view(B, -1): (2, 4, 16, 16) -> D = 1024
    B, C, Hs, Ws = 2, 4, 16, 16
    x = jax.random.normal(k_x, (B, C, Hs, Ws), jnp.float32)

    params = init_params(k_p, C * Hs * Ws)
    prep = prepare_params(params)            # one-time cast/pad, off the hot path

    out = style_discriminator_forward(x, prep)   # bf16 matmuls, f32 accumulate
    out = jax.block_until_ready(out)

    ref_matched = _reference_forward(x, params, compute_dtype=jnp.bfloat16)
    ref_f32 = _reference_forward(x, params, compute_dtype=jnp.float32)

    assert out.shape == (B, 1), out.shape
    assert jnp.allclose(out, ref_matched, atol=2e-3, rtol=2e-3), \
        "mismatch vs dtype-matched JAX reference"
    assert jnp.allclose(out, ref_f32, atol=1e-1, rtol=1e-1), \
        "mismatch vs f32 JAX reference"

    print("KERNEL_OK")
</pallas_src>

<mosaic_0001>
module attributes {stable_mosaic.version = 11 : i64} {
  func.func @_mlp_kernel(%arg0: i32, %arg1: i32, %arg2: memref<16x1024xbf16, #tpu.memory_space<vmem>>, %arg3: memref<1024x512xbf16, #tpu.memory_space<vmem>>, %arg4: memref<1x512xf32, #tpu.memory_space<vmem>>, %arg5: memref<512x256xbf16, #tpu.memory_space<vmem>>, %arg6: memref<1x256xf32, #tpu.memory_space<vmem>>, %arg7: memref<1x256xf32, #tpu.memory_space<vmem>>, %arg8: memref<1x1xf32, #tpu.memory_space<vmem>>, %arg9: memref<16x128xf32, #tpu.memory_space<vmem>>, %arg10: memref<16x512xf32, #tpu.memory_space<vmem>>) attributes {dimension_semantics = [#tpu.dimension_semantics<parallel>, #tpu.dimension_semantics<arbitrary>], iteration_bounds = array<i64: 1, 1>, scalar_prefetch = 0 : i64, scratch_operands = 1 : i64, tpu.core_type = #tpu.core_type<tc>, window_params = [{transform_indices = @transform_0, window_bounds = array<i64: 16, 1024>}, {transform_indices = @transform_1, window_bounds = array<i64: 1024, 512>}, {pipeline_mode = #tpu.pipeline_mode<synchronous>, transform_indices = @transform_2, window_bounds = array<i64: 1, 512>}, {pipeline_mode = #tpu.pipeline_mode<synchronous>, transform_indices = @transform_3, window_bounds = array<i64: 512, 256>}, {pipeline_mode = #tpu.pipeline_mode<synchronous>, transform_indices = @transform_4, window_bounds = array<i64: 1, 256>}, {pipeline_mode = #tpu.pipeline_mode<synchronous>, transform_indices = @transform_5, window_bounds = array<i64: 1, 256>}, {pipeline_mode = #tpu.pipeline_mode<synchronous>, transform_indices = @transform_6, window_bounds = array<i64: 1, 1>}, {transform_indices = @transform_7, window_bounds = array<i64: 16, 128>}]} {
    %c0_i32 = arith.constant 0 : i32
    %0 = arith.cmpi eq, %arg1, %c0_i32 : i32
    %1 = arith.extui %0 : i1 to i32
    %c0_i32_0 = arith.constant 0 : i32
    %2 = arith.cmpi ne, %1, %c0_i32_0 : i32
    scf.if %2 {
      %cst_10 = arith.constant 0.000000e+00 : f32
      %12 = vector.broadcast %cst_10 : f32 to vector<16x512xf32>
      %c0_11 = arith.constant 0 : index
      %c0_12 = arith.constant 0 : index
      %13 = vector.load %arg10[%c0_11, %c0_12] : memref<16x512xf32, #tpu.memory_space<vmem>>, vector<16x512xf32>
      tpu.vector_store %arg10[%c0_11, %c0_12], %12 {strides = array<i32>} : memref<16x512xf32, #tpu.memory_space<vmem>>, vector<16x512xf32>,
    } else {
    }
    %c0 = arith.constant 0 : index
    %c0_1 = arith.constant 0 : index
    %3 = vector.load %arg10[%c0, %c0_1] : memref<16x512xf32, #tpu.memory_space<vmem>>, vector<16x512xf32>
    %c0_2 = arith.constant 0 : index
    %c0_3 = arith.constant 0 : index
    %4 = vector.load %arg2[%c0_2, %c0_3] : memref<16x1024xbf16, #tpu.memory_space<vmem>>, vector<16x1024xbf16>
    %c0_4 = arith.constant 0 : index
    %c0_5 = arith.constant 0 : index
    %5 = vector.load %arg3[%c0_4, %c0_5] : memref<1024x512xbf16, #tpu.memory_space<vmem>>, vector<1024x512xbf16>
    %cst = arith.constant dense<0.000000e+00> : vector<16x512xf32>
    %6 = tpu.matmul %4, %5, %cst {dimension_numbers = #tpu.dot_dimension_numbers<[1], [0], [0], [1], [0, 0, 1, 1], [], []>} : vector<16x1024xbf16>, vector<1024x512xbf16>, vector<16x512xf32> -> vector<16x512xf32>
    %7 = arith.addf %3, %6 : vector<16x512xf32>
    %c0_6 = arith.constant 0 : index
    %c0_7 = arith.constant 0 : index
    %8 = vector.load %arg10[%c0_6, %c0_7] : memref<16x512xf32, #tpu.memory_space<vmem>>, vector<16x512xf32>
    tpu.vector_store %arg10[%c0_6, %c0_7], %7 {strides = array<i32>} : memref<16x512xf32, #tpu.memory_space<vmem>>, vector<16x512xf32>,
    %c0_i32_8 = arith.constant 0 : i32
    %9 = arith.cmpi eq, %arg1, %c0_i32_8 : i32
    %10 = arith.extui %9 : i1 to i32
    %c0_i32_9 = arith.constant 0 : i32
    %11 = arith.cmpi ne, %10, %c0_i32_9 : i32
    scf.if %11 {
      %c0_10 = arith.constant 0 : index
      %c0_11 = arith.constant 0 : index
      %12 = vector.load %arg10[%c0_10, %c0_11] : memref<16x512xf32, #tpu.memory_space<vmem>>, vector<16x512xf32>
      %c0_12 = arith.constant 0 : index
      %c0_13 = arith.constant 0 : index
      %13 = vector.load %arg4[%c0_12, %c0_13] : memref<1x512xf32, #tpu.memory_space<vmem>>, vector<1x512xf32>
      %14 = vector.broadcast %13 : vector<1x512xf32> to vector<16x512xf32>
      %15 = arith.addf %12, %14 : vector<16x512xf32>
      %cst_14 = arith.constant 0.000000e+00 : f32
      %16 = vector.broadcast %cst_14 : f32 to vector<16x512xf32>
      %17 = arith.cmpf ogt, %15, %16 : vector<16x512xf32>
      %cst_15 = arith.constant 2.000000e-01 : f32
      %18 = vector.broadcast %cst_15 : f32 to vector<16x512xf32>
      %19 = arith.mulf %18, %15 : vector<16x512xf32>
      %20 = arith.select %17, %15, %19 : vector<16x512xi1>, vector<16x512xf32>
      %c0_16 = arith.constant 0 : index
      %c0_17 = arith.constant 0 : index
      %21 = vector.load %arg10[%c0_16, %c0_17] : memref<16x512xf32, #tpu.memory_space<vmem>>, vector<16x512xf32>
      tpu.vector_store %arg10[%c0_16, %c0_17], %20 {strides = array<i32>} : memref<16x512xf32, #tpu.memory_space<vmem>>, vector<16x512xf32>,
      %c0_18 = arith.constant 0 : index
      %c0_19 = arith.constant 0 : index
      %22 = vector.load %arg10[%c0_18, %c0_19] : memref<16x512xf32, #tpu.memory_space<vmem>>, vector<16x512xf32>
      %23 = arith.truncf %22 : vector<16x512xf32> to vector<16x512xbf16>
      %c0_20 = arith.constant 0 : index
      %c0_21 = arith.constant 0 : index
      %24 = vector.load %arg5[%c0_20, %c0_21] : memref<512x256xbf16, #tpu.memory_space<vmem>>, vector<512x256xbf16>
      %cst_22 = arith.constant dense<0.000000e+00> : vector<16x256xf32>
      %25 = tpu.matmul %23, %24, %cst_22 {dimension_numbers = #tpu.dot_dimension_numbers<[1], [0], [0], [1], [0, 0, 1, 1], [], []>} : vector<16x512xbf16>, vector<512x256xbf16>, vector<16x256xf32> -> vector<16x256xf32>
      %c0_23 = arith.constant 0 : index
      %c0_24 = arith.constant 0 : index
      %26 = vector.load %arg6[%c0_23, %c0_24] : memref<1x256xf32, #tpu.memory_space<vmem>>, vector<1x256xf32>
      %27 = vector.broadcast %26 : vector<1x256xf32> to vector<16x256xf32>
      %28 = arith.addf %25, %27 : vector<16x256xf32>
      %cst_25 = arith.constant 0.000000e+00 : f32
      %29 = vector.broadcast %cst_25 : f32 to vector<16x256xf32>
      %30 = arith.cmpf ogt, %28, %29 : vector<16x256xf32>
      %cst_26 = arith.constant 2.000000e-01 : f32
      %31 = vector.broadcast %cst_26 : f32 to vector<16x256xf32>
      %32 = arith.mulf %31, %28 : vector<16x256xf32>
      %33 = arith.select %30, %28, %32 : vector<16x256xi1>, vector<16x256xf32>
      %c0_27 = arith.constant 0 : index
      %c0_28 = arith.constant 0 : index
      %34 = vector.load %arg7[%c0_27, %c0_28] : memref<1x256xf32, #tpu.memory_space<vmem>>, vector<1x256xf32>
      %35 = vector.broadcast %34 : vector<1x256xf32> to vector<16x256xf32>
      %36 = arith.mulf %33, %35 : vector<16x256xf32>
      %cst_29 = arith.constant dense<0.000000e+00> : vector<16xf32>
      %37 = vector.multi_reduction <add>, %36, %cst_29 [1] : vector<16x256xf32> to vector<16xf32>
      %38 = vector.shape_cast %37 : vector<16xf32> to vector<16x1xf32>
      %c0_30 = arith.constant 0 : index
      %c0_31 = arith.constant 0 : index
      %39 = vector.load %arg8[%c0_30, %c0_31] : memref<1x1xf32, #tpu.memory_space<vmem>>, vector<1x1xf32>
      %40 = vector.broadcast %39 : vector<1x1xf32> to vector<16x1xf32>
      %41 = arith.addf %38, %40 : vector<16x1xf32>
      %42 = vector.shape_cast %41 : vector<16x1xf32> to vector<16x1xf32>
      %43 = vector.broadcast %42 : vector<16x1xf32> to vector<16x128xf32>
      %c0_32 = arith.constant 0 : index
      %c0_33 = arith.constant 0 : index
      %44 = vector.load %arg9[%c0_32, %c0_33] : memref<16x128xf32, #tpu.memory_space<vmem>>, vector<16x128xf32>
      tpu.vector_store %arg9[%c0_32, %c0_33], %43 {strides = array<i32>} : memref<16x128xf32, #tpu.memory_space<vmem>>, vector<16x128xf32>,
    } else {
    }
    return
  }
  func.func @transform_0(%arg0: i32, %arg1: i32) -> (i32, i32) {
    %c0_i32 = arith.constant 0 : i32
    return %arg0, %arg1 : i32, i32
  }
  func.func @transform_1(%arg0: i32, %arg1: i32) -> (i32, i32) {
    %c0_i32 = arith.constant 0 : i32
    %c0_i32_0 = arith.constant 0 : i32
    return %arg1, %c0_i32 : i32, i32
  }
  func.func @transform_2(%arg0: i32, %arg1: i32) -> (i32, i32) {
    %c0_i32 = arith.constant 0 : i32
    %c0_i32_0 = arith.constant 0 : i32
    %c0_i32_1 = arith.constant 0 : i32
    return %c0_i32, %c0_i32_0 : i32, i32
  }
  func.func @transform_3(%arg0: i32, %arg1: i32) -> (i32, i32) {
    %c0_i32 = arith.constant 0 : i32
    %c0_i32_0 = arith.constant 0 : i32
    %c0_i32_1 = arith.constant 0 : i32
    return %c0_i32, %c0_i32_0 : i32, i32
  }
  func.func @transform_4(%arg0: i32, %arg1: i32) -> (i32, i32) {
    %c0_i32 = arith.constant 0 : i32
    %c0_i32_0 = arith.constant 0 : i32
    %c0_i32_1 = arith.constant 0 : i32
    return %c0_i32, %c0_i32_0 : i32, i32
  }
  func.func @transform_5(%arg0: i32, %arg1: i32) -> (i32, i32) {
    %c0_i32 = arith.constant 0 : i32
    %c0_i32_0 = arith.constant 0 : i32
    %c0_i32_1 = arith.constant 0 : i32
    return %c0_i32, %c0_i32_0 : i32, i32
  }
  func.func @transform_6(%arg0: i32, %arg1: i32) -> (i32, i32) {
    %c0_i32 = arith.constant 0 : i32
    %c0_i32_0 = arith.constant 0 : i32
    %c0_i32_1 = arith.constant 0 : i32
    return %c0_i32, %c0_i32_0 : i32, i32
  }
  func.func @transform_7(%arg0: i32, %arg1: i32) -> (i32, i32) {
    %c0_i32 = arith.constant 0 : i32
    %c0_i32_0 = arith.constant 0 : i32
    return %arg0, %c0_i32 : i32, i32
  }
}

</mosaic_0001>

<bundles_post_ra>
// kernel: tpu_custom_call.1
= control target key start
LH: loop header
LB: loop body
LE: loop exit
PB: predicated region body
PF: predicated region fallthrough
CT: control target
= control target key end

     0   :  { %s4778_s0 = inlined_call_operand.hbm [shape: bf16[16,1024], index: 0, kind: input, shape index: {}]   ;;  %s4779_s1 = inlined_call_operand.hbm [shape: bf16[1024,512], index: 1, kind: input, shape index: {}]   ;;  %s4780_s2 = inlined_call_operand.hbm [shape: f32[1,512], index: 2, kind: input, shape index: {}]   ;;  %s4781_s3 = inlined_call_operand.hbm [shape: bf16[512,256], index: 3, kind: input, shape index: {}]   ;;  %s4782_s4 = inlined_call_operand.vmem [shape: f32[1,256], index: 4, kind: input, shape index: {}]   ;;  %s4783_s5 = inlined_call_operand.vmem [shape: f32[1,256], index: 5, kind: input, shape index: {}]   ;;  %s4784_s6 = inlined_call_operand.<no memory space> [shape: f32[1,1], index: 6, kind: input, shape index: {}]   ;;  %s4785_s7 = inlined_call_operand.hbm [shape: f32[16,128], index: 7, kind: output, shape index: {}]  }
   0x1   :  { %v12_v0 = vstv %s4784_s6 }
   0x2   :  { %13 = vst [vmem:[#allocation3] sm:$0x1] %v12_v0 }
   0x3   :  { %14 = vsyncpa [#allocation5], 0 }
   0x4   :  { %15 = vsyncpa [#allocation8], 0 }
   0x5   :  { %16 = vsyncpa [#allocation11], 0  ;;  %s35_s28 = sshll.u32 %s4779_s1, 4  ;;  %s36_s28 = int_to_ptr.hbm [resolvable:$true] %s35_s28 }
   0x6   :  { %17 = vsyncpa [#allocation6], 0  ;;  %s4583_s29 = smov [#allocation7]   ;;  %s22_s10 = sshll.u32 %s4778_s0, 4  ;;  %s23_s10 = int_to_ptr.hbm [resolvable:$true] %s22_s10 }
   0x7   :  { %s37_s30 = sshll.u32 %s4583_s29, 4  ;;  %s4584_s11 = smov 256   ;;  %s38_s30 = int_to_ptr.vmem [resolvable:$true] %s37_s30 }
   0x8   :  { %s4585_s12 = smov 16   ;;  %s4586_s6 = smov [#allocation4]  }
   0x9   :  { %43 = dma.hbm_to_vmem [thread:$0]  %s36_s28, 32768, %s38_s30, [#allocation8], %s4584_s11, %s4584_s11, %s4585_s12  }
   0xa   :  { %s24_s13 = sshll.u32 %s4586_s6, 4  ;;  %s4587_s14 = smov 512   ;;  %s25_s13 = int_to_ptr.vmem [resolvable:$true] %s24_s13 }
   0xb   :  { %s4588_s15 = smov 32   ;;  %s49_s17 = sshll.u32 %s4780_s2, 4  ;;  %s50_s17 = int_to_ptr.hbm [resolvable:$true] %s49_s17 }
   0xc   :  { %30 = dma.hbm_to_vmem [thread:$0]  %s23_s10, 1024, %s25_s13, [#allocation5], %s4587_s14, %s4587_s14, %s4588_s15  }
   0xd   :  { %s4589_s18 = smov [#allocation9]   ;;  %s59_s21 = sshll.u32 %s4781_s3, 4  ;;  %s60_s21 = int_to_ptr.hbm [resolvable:$true] %s59_s21 }
   0xe   :  { %s51_s19 = sshll.u32 %s4589_s18, 4  ;;  %s4590_s22 = smov [#allocation10]   ;;  %s52_s19 = int_to_ptr.vmem [resolvable:$true] %s51_s19 }
   0xf   :  { %54 = dma.hbm_to_vmem [thread:$0]  %s50_s17, 64, %s52_s19, [#allocation8]  }
  0x10   :  { %s61_s23 = sshll.u32 %s4590_s22, 4  ;;  %s4591_s24 = smov 128   ;;  %s62_s23 = int_to_ptr.vmem [resolvable:$true] %s61_s23 }
  0x11   :  { %s4592_s25 = smov 8  }
  0x12   :  { %67 = dma.hbm_to_vmem [thread:$0]  %s60_s21, 8192, %s62_s23, [#allocation11], %s4591_s24, %s4591_s24, %s4592_s25  }
  0x13   :  { %4575 = dma.done.wait [#allocation5], 1024  }
  0x14   :  { %4576 = vsyncadd [#allocation5], 4294966272 }
  0x15   :  { %4577 = dma.done.wait [#allocation8], 32832  }
  0x16   :  { %4578 = vsyncadd [#allocation8], 4294934464 }
  0x17   :  { %4579 = dma.done.wait [#allocation11], 8192  }
  0x18   :  { %4580 = vsyncadd [#allocation11], 4294959104  ;;  %v2946_v1 = vld [vmem:[#allocation7 + $0xe0] sm:$0xf]  ;;  %v4150_v2 = vld [vmem:[#allocation7 + $0xec] sm:$0xf0] }
  0x19   :  { %v3074_v3 = vld [vmem:[#allocation7 + $0x1e0] sm:$0xf]  ;;  %v2947_v4 = vor.u32 %v4150_v2, %v2946_v1  ;;  %v4182_v5 = vld [vmem:[#allocation7 + $0x1ec] sm:$0xf0]  ;;  %s2785_s30 = sshll.u32 %s4785_s7, 4  ;;  %s2786_s30 = int_to_ptr.hbm [resolvable:$true] %s2785_s30 }
  0x1a   :  { %v3202_v6 = vld [vmem:[#allocation7 + $0x2e0] sm:$0xf]  ;;  %v4214_v7 = vld [vmem:[#allocation7 + $0x2ec] sm:$0xf0]  ;;  %v3075_v8 = vor.u32 %v4182_v5, %v3074_v3 }
  0x1b   :  { %v3203_v9 = vor.u32 %v4214_v7, %v3202_v6  ;;  %v3330_v10 = vld [vmem:[#allocation7 + $0x3e0] sm:$0xf]  ;;  %v4246_v11 = vld [vmem:[#allocation7 + $0x3ec] sm:$0xf0]  ;;  %1694 = vmatpush.bf16.msra.mxu0 %v2947_v4 }
  0x1c   :  { %v2930_v12 = vld [vmem:[#allocation7 + $0xc0] sm:$0xf]  ;;  %v3331_v13 = vor.u32 %v4246_v11, %v3330_v10  ;;  %v4146_v14 = vld [vmem:[#allocation7 + $0xcc] sm:$0xf0]  ;;  %1708 = vmatpush.bf16.msra.mxu1 %v3075_v8 }
  0x1d   :  { %v3058_v15 = vld [vmem:[#allocation7 + $0x1c0] sm:$0xf]  ;;  %v4178_v16 = vld [vmem:[#allocation7 + $0x1cc] sm:$0xf0]  ;;  %1722 = vmatpush.bf16.msra.mxu2 %v3203_v9  ;;  %v2931_v17 = vor.u32 %v4146_v14, %v2930_v12 }
  0x1e   :  { %v3059_v18 = vor.u32 %v4178_v16, %v3058_v15  ;;  %v3186_v19 = vld [vmem:[#allocation7 + $0x2c0] sm:$0xf]  ;;  %v4210_v20 = vld [vmem:[#allocation7 + $0x2cc] sm:$0xf0]  ;;  %1736 = vmatpush.bf16.msra.mxu3 %v3331_v13 }
  0x1f   :  { %v3314_v21 = vld [vmem:[#allocation7 + $0x3c0] sm:$0xf]  ;;  %v3187_v22 = vor.u32 %v4210_v20, %v3186_v19  ;;  %v4242_v23 = vld [vmem:[#allocation7 + $0x3cc] sm:$0xf0]  ;;  %1695 = vmatpush.bf16.msra.mxu0 %v2931_v17 }
  0x20   :  { %v2914_v24 = vld [vmem:[#allocation7 + $0xa0] sm:$0xf]  ;;  %v4142_v25 = vld [vmem:[#allocation7 + $0xac] sm:$0xf0]  ;;  %v3315_v26 = vor.u32 %v4242_v23, %v3314_v21  ;;  %1709 = vmatpush.bf16.msra.mxu1 %v3059_v18 }
  0x21   :  { %v3042_v27 = vld [vmem:[#allocation7 + $0x1a0] sm:$0xf]  ;;  %v4174_v28 = vld [vmem:[#allocation7 + $0x1ac] sm:$0xf0]  ;;  %v2915_v30 = vor.u32 %v4142_v25, %v2914_v24  ;;  %1723 = vmatpush.bf16.msra.mxu2 %v3187_v22 }
  0x22   :  { %v3170_v29 = vld [vmem:[#allocation7 + $0x2a0] sm:$0xf]  ;;  %v4206_v31 = vld [vmem:[#allocation7 + $0x2ac] sm:$0xf0]  ;;  %v3043_v34 = vor.u32 %v4174_v28, %v3042_v27  ;;  %1737 = vmatpush.bf16.msra.mxu3 %v3315_v26 }
  0x23   :  { %v3298_v32 = vld [vmem:[#allocation7 + $0x3a0] sm:$0xf]  ;;  %v4238_v33 = vld [vmem:[#allocation7 + $0x3ac] sm:$0xf0]  ;;  %v3171_v35 = vor.u32 %v4206_v31, %v3170_v29  ;;  %1696 = vmatpush.bf16.msra.mxu0 %v2915_v30 }
  0x24   :  { %v2898_v36 = vld [vmem:[#allocation7 + $0x80] sm:$0xf]  ;;  %v4138_v37 = vld [vmem:[#allocation7 + $0x8c] sm:$0xf0]  ;;  %v3299_v39 = vor.u32 %v4238_v33, %v3298_v32  ;;  %1710 = vmatpush.bf16.msra.mxu1 %v3043_v34 }
  0x25   :  { %v3026_v38 = vld [vmem:[#allocation7 + $0x180] sm:$0xf]  ;;  %v4170_v40 = vld [vmem:[#allocation7 + $0x18c] sm:$0xf0]  ;;  %v2899_v45 = vor.u32 %v4138_v37, %v2898_v36  ;;  %1724 = vmatpush.bf16.msra.mxu2 %v3171_v35 }
  0x26   :  { %v3154_v41 = vld [vmem:[#allocation7 + $0x280] sm:$0xf]  ;;  %v4202_v42 = vld [vmem:[#allocation7 + $0x28c] sm:$0xf0]  ;;  %v3027_v46 = vor.u32 %v4170_v40, %v3026_v38  ;;  %1738 = vmatpush.bf16.msra.mxu3 %v3299_v39 }
  0x27   :  { %v3282_v43 = vld [vmem:[#allocation7 + $0x380] sm:$0xf]  ;;  %v4234_v44 = vld [vmem:[#allocation7 + $0x38c] sm:$0xf0]  ;;  %v3155_v47 = vor.u32 %v4202_v42, %v3154_v41  ;;  %1697 = vmatpush.bf16.msra.mxu0 %v2899_v45 }
  0x28   :  { %v2882_v48 = vld [vmem:[#allocation7 + $0x60] sm:$0xf]  ;;  %v4134_v49 = vld [vmem:[#allocation7 + $0x6c] sm:$0xf0]  ;;  %v3283_v51 = vor.u32 %v4234_v44, %v3282_v43  ;;  %1711 = vmatpush.bf16.msra.mxu1 %v3027_v46 }
  0x29   :  { %v3010_v50 = vld [vmem:[#allocation7 + $0x160] sm:$0xf]  ;;  %v4166_v52 = vld [vmem:[#allocation7 + $0x16c] sm:$0xf0]  ;;  %v2883_v57 = vor.u32 %v4134_v49, %v2882_v48  ;;  %1725 = vmatpush.bf16.msra.mxu2 %v3155_v47 }
  0x2a   :  { %v3138_v53 = vld [vmem:[#allocation7 + $0x260] sm:$0xf]  ;;  %v4198_v54 = vld [vmem:[#allocation7 + $0x26c] sm:$0xf0]  ;;  %v3011_v58 = vor.u32 %v4166_v52, %v3010_v50  ;;  %1739 = vmatpush.bf16.msra.mxu3 %v3283_v51 }
  0x2b   :  { %v3266_v55 = vld [vmem:[#allocation7 + $0x360] sm:$0xf]  ;;  %v4230_v56 = vld [vmem:[#allocation7 + $0x36c] sm:$0xf0]  ;;  %v3139_v59 = vor.u32 %v4198_v54, %v3138_v53  ;;  %1698 = vmatpush.bf16.msra.mxu0 %v2883_v57 }
  0x2c   :  { %v2866_v60 = vld [vmem:[#allocation7 + $0x40] sm:$0xf]  ;;  %v4130_v61 = vld [vmem:[#allocation7 + $0x4c] sm:$0xf0]  ;;  %v3267_v63 = vor.u32 %v4230_v56, %v3266_v55  ;;  %1712 = vmatpush.bf16.msra.mxu1 %v3011_v58  ;;  %v2810_v55 = vld [vmem:[#allocation4 + $0x8] sm:$0xf] }
  0x2d   :  { %v2994_v62 = vld [vmem:[#allocation7 + $0x140] sm:$0xf]  ;;  %v4162_v0 = vld [vmem:[#allocation7 + $0x14c] sm:$0xf0]  ;;  %v2867_v5 = vor.u32 %v4130_v61, %v2866_v60  ;;  %1726 = vmatpush.bf16.msra.mxu2 %v3139_v59  ;;  %v4117_v60 = vld [vmem:[#allocation4 + $0x24] sm:$0xf0] }
  0x2e   :  { %v3122_v1 = vld [vmem:[#allocation7 + $0x240] sm:$0xf]  ;;  %v4194_v2 = vld [vmem:[#allocation7 + $0x24c] sm:$0xf0]  ;;  %v2995_v6 = vor.u32 %v4162_v0, %v2994_v62  ;;  %1740 = vmatpush.bf16.msra.mxu3 %v3267_v63 }
  0x2f   :  { %v3250_v3 = vld [vmem:[#allocation7 + $0x340] sm:$0xf]  ;;  %v4226_v4 = vld [vmem:[#allocation7 + $0x34c] sm:$0xf0]  ;;  %v3123_v7 = vor.u32 %v4194_v2, %v3122_v1  ;;  %1699 = vmatpush.bf16.msra.mxu0 %v2867_v5  ;;  %v4655_v2 = vor.u32 %v4117_v60, %v2810_v55 }
  0x30   :  { %v2850_v8 = vld [vmem:[#allocation7 + $0x20] sm:$0xf]  ;;  %v4126_v9 = vld [vmem:[#allocation7 + $0x2c] sm:$0xf0]  ;;  %v3251_v11 = vor.u32 %v4226_v4, %v3250_v3  ;;  %1713 = vmatpush.bf16.msra.mxu1 %v2995_v6 }
  0x31   :  { %v2978_v10 = vld [vmem:[#allocation7 + $0x120] sm:$0xf]  ;;  %v4158_v12 = vld [vmem:[#allocation7 + $0x12c] sm:$0xf0]  ;;  %v2851_v17 = vor.u32 %v4126_v9, %v2850_v8  ;;  %1727 = vmatpush.bf16.msra.mxu2 %v3123_v7  ;;  %v4112_v7 = vld [vmem:[#allocation4 + $0x4] sm:$0xf] }
  0x32   :  { %v3106_v13 = vld [vmem:[#allocation7 + $0x220] sm:$0xf]  ;;  %v4190_v14 = vld [vmem:[#allocation7 + $0x22c] sm:$0xf0]  ;;  %v2979_v20 = vor.u32 %v4158_v12, %v2978_v10  ;;  %1741 = vmatpush.bf16.msra.mxu3 %v3251_v11  ;;  %v2804_v8 = vld [vmem:[#allocation4 + $0x20] sm:$0xf0] }
  0x33   :  { %v3234_v15 = vld [vmem:[#allocation7 + $0x320] sm:$0xf]  ;;  %v4222_v16 = vld [vmem:[#allocation7 + $0x32c] sm:$0xf0]  ;;  %v3107_v21 = vor.u32 %v4190_v14, %v3106_v13  ;;  %1700 = vmatpush.bf16.msra.mxu0 %v2851_v17  ;;  %v4113_v9 = vld [vmem:[#allocation4 + $0xc] sm:$0xf]  ;;  %v4659_v11 = vor.u32 %v4112_v7, %v2804_v8 }
  0x34   :  { %v2834_v18 = vld [vmem:[#allocation7] sm:$0xf]  ;;  %v4122_v19 = vld [vmem:[#allocation7 + $0xc] sm:$0xf0]  ;;  %v3235_v25 = vor.u32 %v4222_v16, %v3234_v15  ;;  %1714 = vmatpush.bf16.msra.mxu1 %v2979_v20  ;;  %v2812_v12 = vld [vmem:[#allocation4 + $0x28] sm:$0xf0] }
  0x35   :  { %v2962_v22 = vld [vmem:[#allocation7 + $0x100] sm:$0xf]  ;;  %v4154_v23 = vld [vmem:[#allocation7 + $0x10c] sm:$0xf0]  ;;  %v2835_v32 = vor.u32 %v4122_v19, %v2834_v18  ;;  %1728 = vmatpush.bf16.msra.mxu2 %v3107_v21  ;;  %v4661_v18 = vor.u32 %v4113_v9, %v2812_v12 }
  0x36   :  { %v3090_v24 = vld [vmem:[#allocation7 + $0x200] sm:$0xf]  ;;  %v4186_v26 = vld [vmem:[#allocation7 + $0x20c] sm:$0xf0]  ;;  %v2963_v36 = vor.u32 %v4154_v23, %v2962_v22  ;;  %1742 = vmatpush.bf16.msra.mxu3 %v3235_v25 }
  0x37   :  { %v3218_v27 = vld [vmem:[#allocation7 + $0x300] sm:$0xf]  ;;  %v4218_v28 = vld [vmem:[#allocation7 + $0x30c] sm:$0xf0]  ;;  %v3091_v37 = vor.u32 %v4186_v26, %v3090_v24  ;;  %1701 = vmatpush.bf16.msra.mxu0 %v2835_v32 }
  0x38   :  { %v3458_v29 = vld [vmem:[#allocation7 + $0x4e0] sm:$0xf]  ;;  %v4278_v30 = vld [vmem:[#allocation7 + $0x4ec] sm:$0xf0]  ;;  %v3219_v40 = vor.u32 %v4218_v28, %v3218_v27  ;;  %1715 = vmatpush.bf16.msra.mxu1 %v2963_v36 }
  0x39   :  { %v3586_v31 = vld [vmem:[#allocation7 + $0x5e0] sm:$0xf]  ;;  %v4310_v33 = vld [vmem:[#allocation7 + $0x5ec] sm:$0xf0]  ;;  %v3459_v41 = vor.u32 %v4278_v30, %v3458_v29  ;;  %1729 = vmatpush.bf16.msra.mxu2 %v3091_v37 }
  0x3a   :  { %v3714_v34 = vld [vmem:[#allocation7 + $0x6e0] sm:$0xf]  ;;  %v4342_v35 = vld [vmem:[#allocation7 + $0x6ec] sm:$0xf0]  ;;  %v3587_v44 = vor.u32 %v4310_v33, %v3586_v31  ;;  %1743 = vmatpush.bf16.msra.mxu3 %v3219_v40 }
  0x3b   :  { %v3842_v38 = vld [vmem:[#allocation7 + $0x7e0] sm:$0xf]  ;;  %v4374_v39 = vld [vmem:[#allocation7 + $0x7ec] sm:$0xf0]  ;;  %v3715_v45 = vor.u32 %v4342_v35, %v3714_v34  ;;  %1750 = vmatpush.bf16.msrb.mxu0 %v3459_v41  ;;  %1716 = vmatmul.bf16.vlgmr.msra.gmra.mxu1 %v4659_v11 }
  0x3c   :  { %v3442_v42 = vld [vmem:[#allocation7 + $0x4c0] sm:$0xf]  ;;  %v4274_v43 = vld [vmem:[#allocation7 + $0x4cc] sm:$0xf0]  ;;  %v3843_v49 = vor.u32 %v4374_v39, %v3842_v38  ;;  %1764 = vmatpush.bf16.msrb.mxu1 %v3587_v44  ;;  %1730 = vmatmul.bf16.vlgmr.msra.gmra.mxu2 %v4655_v2 }
  0x3d   :  { %v3570_v46 = vld [vmem:[#allocation7 + $0x5c0] sm:$0xf]  ;;  %v4306_v47 = vld [vmem:[#allocation7 + $0x5cc] sm:$0xf0]  ;;  %v3443_v56 = vor.u32 %v4274_v43, %v3442_v42  ;;  %1778 = vmatpush.bf16.msrb.mxu2 %v3715_v45  ;;  %1744 = vmatmul.bf16.vlgmr.msra.gmra.mxu3 %v4661_v18 }
  0x3e   :  { %v3698_v48 = vld [vmem:[#allocation7 + $0x6c0] sm:$0xf]  ;;  %v4338_v50 = vld [vmem:[#allocation7 + $0x6cc] sm:$0xf0]  ;;  %v3571_v61 = vor.u32 %v4306_v47, %v3570_v46  ;;  %1792 = vmatpush.bf16.msrb.mxu3 %v3843_v49 }
  0x3f   :  { %v3826_v51 = vld [vmem:[#allocation7 + $0x7c0] sm:$0xf]  ;;  %v4370_v52 = vld [vmem:[#allocation7 + $0x7cc] sm:$0xf0]  ;;  %v3699_v62 = vor.u32 %v4338_v50, %v3698_v48  ;;  %1751 = vmatpush.bf16.msrb.mxu0 %v3443_v56 }
  0x40   :  { %v2802_v53 = vld [vmem:[#allocation4] sm:$0xf]  ;;  %v4270_v58 = vld [vmem:[#allocation7 + $0x4ac] sm:$0xf0]  ;;  %v3827_v3 = vor.u32 %v4370_v52, %v3826_v51  ;;  %1765 = vmatpush.bf16.msrb.mxu1 %v3571_v61 }
  0x41   :  { %v4116_v54 = vld [vmem:[#allocation4 + $0x1c] sm:$0xf0]  ;;  %v4302_v0 = vld [vmem:[#allocation7 + $0x5ac] sm:$0xf0]  ;;  %1779 = vmatpush.bf16.msrb.mxu2 %v3699_v62 }
  0x42   :  { %v3426_v57 = vld [vmem:[#allocation7 + $0x4a0] sm:$0xf]  ;;  %v4653_v59 = vor.u32 %v4116_v54, %v2802_v53  ;;  %v4334_v4 = vld [vmem:[#allocation7 + $0x6ac] sm:$0xf0]  ;;  %1793 = vmatpush.bf16.msrb.mxu3 %v3827_v3 }
  0x43   :  { %v3554_v63 = vld [vmem:[#allocation7 + $0x5a0] sm:$0xf]  ;;  %v4366_v6 = vld [vmem:[#allocation7 + $0x7ac] sm:$0xf0]  ;;  %v3427_v10 = vor.u32 %v4270_v58, %v3426_v57 }
  0x44   :  { %v3682_v1 = vld [vmem:[#allocation7 + $0x6a0] sm:$0xf]  ;;  %1702 = vmatmul.bf16.vlgmr.msra.gmra.mxu0 %v4653_v59  ;;  %v3555_v13 = vor.u32 %v4302_v0, %v3554_v63  ;;  %v4266_v16 = vld [vmem:[#allocation7 + $0x48c] sm:$0xf0] }
  0x45   :  { %v3810_v5 = vld [vmem:[#allocation7 + $0x7a0] sm:$0xf]  ;;  %v3683_v14 = vor.u32 %v4334_v4, %v3682_v1  ;;  %v4298_v20 = vld [vmem:[#allocation7 + $0x58c] sm:$0xf0]  ;;  %1752 = vmatpush.bf16.msrb.mxu0 %v3427_v10  ;;  %v4148_v10 = vld [vmem:[#allocation7 + $0xe4] sm:$0xf] }
  0x46   :  { %v3410_v15 = vld [vmem:[#allocation7 + $0x480] sm:$0xf]  ;;  %v3811_v19 = vor.u32 %v4366_v6, %v3810_v5  ;;  %v4330_v22 = vld [vmem:[#allocation7 + $0x68c] sm:$0xf0]  ;;  %1766 = vmatpush.bf16.msrb.mxu1 %v3555_v13  ;;  %v2948_v13 = vld [vmem:[#allocation7 + $0xf0] sm:$0xf0] }
  0x47   :  { %v3538_v17 = vld [vmem:[#allocation7 + $0x580] sm:$0xf]  ;;  %v4362_v24 = vld [vmem:[#allocation7 + $0x78c] sm:$0xf0]  ;;  %v3411_v25 = vor.u32 %v4266_v16, %v3410_v15  ;;  %1780 = vmatpush.bf16.msrb.mxu2 %v3683_v14  ;;  %v4180_v14 = vld [vmem:[#allocation7 + $0x1e4] sm:$0xf] }
  0x48   :  { %v3666_v21 = vld [vmem:[#allocation7 + $0x680] sm:$0xf]  ;;  %v3539_v26 = vor.u32 %v4298_v20, %v3538_v17  ;;  %v4262_v29 = vld [vmem:[#allocation7 + $0x46c] sm:$0xf0]  ;;  %1794 = vmatpush.bf16.msrb.mxu3 %v3811_v19  ;;  %v3076_v15 = vld [vmem:[#allocation7 + $0x1f0] sm:$0xf0] }
  0x49   :  { %v3794_v23 = vld [vmem:[#allocation7 + $0x780] sm:$0xf]  ;;  %v3667_v27 = vor.u32 %v4330_v22, %v3666_v21  ;;  %v4294_v32 = vld [vmem:[#allocation7 + $0x56c] sm:$0xf0]  ;;  %1753 = vmatpush.bf16.msrb.mxu0 %v3411_v25  ;;  %v4212_v16 = vld [vmem:[#allocation7 + $0x2e4] sm:$0xf] }
  0x4a   :  { %v3394_v28 = vld [vmem:[#allocation7 + $0x460] sm:$0xf]  ;;  %v3795_v31 = vor.u32 %v4362_v24, %v3794_v23  ;;  %v4326_v34 = vld [vmem:[#allocation7 + $0x66c] sm:$0xf0]  ;;  %1767 = vmatpush.bf16.msrb.mxu1 %v3539_v26  ;;  %v3204_v17 = vld [vmem:[#allocation7 + $0x2f0] sm:$0xf0] }
  0x4b   :  { %v3522_v30 = vld [vmem:[#allocation7 + $0x560] sm:$0xf]  ;;  %v4358_v36 = vld [vmem:[#allocation7 + $0x76c] sm:$0xf0]  ;;  %v3395_v37 = vor.u32 %v4262_v29, %v3394_v28  ;;  %1781 = vmatpush.bf16.msrb.mxu2 %v3667_v27  ;;  %v4244_v19 = vld [vmem:[#allocation7 + $0x3e4] sm:$0xf] }
  0x4c   :  { %v3650_v33 = vld [vmem:[#allocation7 + $0x660] sm:$0xf]  ;;  %v3523_v38 = vor.u32 %v4294_v32, %v3522_v30  ;;  %v4258_v41 = vld [vmem:[#allocation7 + $0x44c] sm:$0xf0]  ;;  %1795 = vmatpush.bf16.msrb.mxu3 %v3795_v31  ;;  %v3332_v21 = vld [vmem:[#allocation7 + $0x3f0] sm:$0xf0]  ;;  %v2951_v30 = vor.u32 %v4148_v10, %v2948_v13 }
  0x4d   :  { %v3778_v35 = vld [vmem:[#allocation7 + $0x760] sm:$0xf]  ;;  %v3651_v39 = vor.u32 %v4326_v34, %v3650_v33  ;;  %v4290_v44 = vld [vmem:[#allocation7 + $0x54c] sm:$0xf0]  ;;  %1754 = vmatpush.bf16.msrb.mxu0 %v3395_v37  ;;  %v2826_v26 = vld [vmem:[#allocation4 + $0x18] sm:$0xf]  ;;  %v3079_v34 = vor.u32 %v4180_v14, %v3076_v15 }
  0x4e   :  { %v3378_v40 = vld [vmem:[#allocation7 + $0x440] sm:$0xf]  ;;  %v3779_v43 = vor.u32 %v4358_v36, %v3778_v35  ;;  %v4322_v46 = vld [vmem:[#allocation7 + $0x64c] sm:$0xf0]  ;;  %1768 = vmatpush.bf16.msrb.mxu1 %v3523_v38  ;;  %v4119_v27 = vld [vmem:[#allocation4 + $0x34] sm:$0xf0]  ;;  %v3207_v35 = vor.u32 %v4212_v16, %v3204_v17 }
  0x4f   :  { %v3506_v42 = vld [vmem:[#allocation7 + $0x540] sm:$0xf]  ;;  %v4354_v48 = vld [vmem:[#allocation7 + $0x74c] sm:$0xf0]  ;;  %v3379_v49 = vor.u32 %v4258_v41, %v3378_v40  ;;  %1782 = vmatpush.bf16.msrb.mxu2 %v3651_v39  ;;  %v4114_v28 = vld [vmem:[#allocation4 + $0x14] sm:$0xf]  ;;  %v3335_v39 = vor.u32 %v4244_v19, %v3332_v21 }
  0x50   :  { %v3634_v45 = vld [vmem:[#allocation7 + $0x640] sm:$0xf]  ;;  %v3507_v51 = vor.u32 %v4290_v44, %v3506_v42  ;;  %v4254_v53 = vld [vmem:[#allocation7 + $0x42c] sm:$0xf0]  ;;  %1796 = vmatpush.bf16.msrb.mxu3 %v3779_v43  ;;  %v2820_v31 = vld [vmem:[#allocation4 + $0x30] sm:$0xf0]  ;;  %v4667_v44 = vor.u32 %v4119_v27, %v2826_v26 }
  0x51   :  { %v3762_v47 = vld [vmem:[#allocation7 + $0x740] sm:$0xf]  ;;  %v3635_v52 = vor.u32 %v4322_v46, %v3634_v45  ;;  %v4286_v55 = vld [vmem:[#allocation7 + $0x52c] sm:$0xf0]  ;;  %1755 = vmatpush.bf16.msrb.mxu0 %v3379_v49  ;;  %v4115_v32 = vld [vmem:[#allocation4 + $0x1c] sm:$0xf]  ;;  %v4669_v45 = vor.u32 %v4114_v28, %v2820_v31 }
  0x52   :  { %v3362_v50 = vld [vmem:[#allocation7 + $0x420] sm:$0xf]  ;;  %v3763_v56 = vor.u32 %v4354_v48, %v3762_v47  ;;  %v4318_v58 = vld [vmem:[#allocation7 + $0x62c] sm:$0xf0]  ;;  %1769 = vmatpush.bf16.msrb.mxu1 %v3507_v51  ;;  %v2828_v33 = vld [vmem:[#allocation4 + $0x38] sm:$0xf0] }
  0x53   :  { %v3490_v54 = vld [vmem:[#allocation7 + $0x520] sm:$0xf]  ;;  %v4350_v61 = vld [vmem:[#allocation7 + $0x72c] sm:$0xf0]  ;;  %v3363_v0 = vor.u32 %v4254_v53, %v3362_v50  ;;  %1783 = vmatpush.bf16.msrb.mxu2 %v3635_v52  ;;  %v4144_v36 = vld [vmem:[#allocation7 + $0xc4] sm:$0xf]  ;;  %v4671_v48 = vor.u32 %v4115_v32, %v2828_v33 }
  0x54   :  { %v3618_v57 = vld [vmem:[#allocation7 + $0x620] sm:$0xf]  ;;  %v4250_v63 = vld [vmem:[#allocation7 + $0x40c] sm:$0xf0]  ;;  %v3491_v6 = vor.u32 %v4286_v55, %v3490_v54  ;;  %1797 = vmatpush.bf16.msrb.mxu3 %v3763_v56  ;;  %v2932_v37 = vld [vmem:[#allocation7 + $0xd0] sm:$0xf0] }
  0x55   :  { %v3746_v60 = vld [vmem:[#allocation7 + $0x720] sm:$0xf]  ;;  %v4282_v3 = vld [vmem:[#allocation7 + $0x50c] sm:$0xf0]  ;;  %v3619_v7 = vor.u32 %v4318_v58, %v3618_v57  ;;  %1756 = vmatpush.bf16.msrb.mxu0 %v3363_v0  ;;  %v4176_v38 = vld [vmem:[#allocation7 + $0x1c4] sm:$0xf]  ;;  %v2935_v49 = vor.u32 %v4144_v36, %v2932_v37 }
  0x56   :  { %v3346_v62 = vld [vmem:[#allocation7 + $0x400] sm:$0xf]  ;;  %v4314_v5 = vld [vmem:[#allocation7 + $0x60c] sm:$0xf0]  ;;  %v3747_v12 = vor.u32 %v4350_v61, %v3746_v60  ;;  %1770 = vmatpush.bf16.msrb.mxu1 %v3491_v6  ;;  %v3060_v41 = vld [vmem:[#allocation7 + $0x1d0] sm:$0xf0] }
  0x57   :  { %v3474_v1 = vld [vmem:[#allocation7 + $0x500] sm:$0xf]  ;;  %v4346_v9 = vld [vmem:[#allocation7 + $0x70c] sm:$0xf0]  ;;  %v3347_v20 = vor.u32 %v4250_v63, %v3346_v62  ;;  %1784 = vmatpush.bf16.msrb.mxu2 %v3619_v7  ;;  %v4208_v42 = vld [vmem:[#allocation7 + $0x2c4] sm:$0xf]  ;;  %v3063_v50 = vor.u32 %v4176_v38, %v3060_v41 }
  0x58   :  { %v3602_v4 = vld [vmem:[#allocation7 + $0x600] sm:$0xf]  ;;  %v2818_v22 = vld [vmem:[#allocation4 + $0x10] sm:$0xf]  ;;  %v3475_v24 = vor.u32 %v4282_v3, %v3474_v1  ;;  %1798 = vmatpush.bf16.msrb.mxu3 %v3747_v12  ;;  %v3188_v43 = vld [vmem:[#allocation7 + $0x2d0] sm:$0xf0] }
  0x59   :  { %v3730_v8 = vld [vmem:[#allocation7 + $0x700] sm:$0xf]  ;;  %v4118_v23 = vld [vmem:[#allocation4 + $0x2c] sm:$0xf0]  ;;  %v3603_v25 = vor.u32 %v4314_v5, %v3602_v4  ;;  %1757 = vmatpush.bf16.msrb.mxu0 %v3347_v20  ;;  %v4240_v46 = vld [vmem:[#allocation7 + $0x3c4] sm:$0xf]  ;;  %v3191_v51 = vor.u32 %v4208_v42, %v3188_v43 }
  0x5a   :  { %v3731_v29 = vor.u32 %v4346_v9, %v3730_v8  ;;  %v4665_v40 = vor.u32 %v4118_v23, %v2818_v22  ;;  %1771 = vmatpush.bf16.msrb.mxu1 %v3475_v24  ;;  %v3316_v47 = vld [vmem:[#allocation7 + $0x3d0] sm:$0xf0]  ;;  %v4140_v52 = vld [vmem:[#allocation7 + $0xa4] sm:$0xf] }
  0x5b   :  { %1785 = vmatpush.bf16.msrb.mxu2 %v3603_v25  ;;  %v2916_v53 = vld [vmem:[#allocation7 + $0xb0] sm:$0xf0]  ;;  %v4172_v54 = vld [vmem:[#allocation7 + $0x1a4] sm:$0xf]  ;;  %v3319_v55 = vor.u32 %v4240_v46, %v3316_v47 }
  0x5c   :  { %1799 = vmatpush.bf16.msrb.mxu3 %v3731_v29  ;;  %1758 = vmatmul.bf16.vlgmr.msrb.gmra.mxu0 %v4665_v40  ;;  %v3044_v56 = vld [vmem:[#allocation7 + $0x1b0] sm:$0xf0]  ;;  %v4204_v57 = vld [vmem:[#allocation7 + $0x2a4] sm:$0xf]  ;;  %v2919_v62 = vor.u32 %v4140_v52, %v2916_v53 }
  0x5d   :  { %1806 = vmatpush.bf16.msra.mxu0 %v2951_v30  ;;  %v3172_v58 = vld [vmem:[#allocation7 + $0x2b0] sm:$0xf0]  ;;  %1772 = vmatmul.bf16.vlgmr.msrb.gmra.mxu1 %v4669_v45  ;;  %v4236_v60 = vld [vmem:[#allocation7 + $0x3a4] sm:$0xf]  ;;  %v3047_v63 = vor.u32 %v4172_v54, %v3044_v56 }
  0x5e   :  { %1820 = vmatpush.bf16.msra.mxu1 %v3079_v34  ;;  %1786 = vmatmul.bf16.vlgmr.msrb.gmra.mxu2 %v4667_v44  ;;  %v3300_v61 = vld [vmem:[#allocation7 + $0x3b0] sm:$0xf0]  ;;  %v3175_v0 = vor.u32 %v4204_v57, %v3172_v58  ;;  %v4136_v1 = vld [vmem:[#allocation7 + $0x84] sm:$0xf] }
  0x5f   :  { %1834 = vmatpush.bf16.msra.mxu2 %v3207_v35  ;;  %1800 = vmatmul.bf16.vlgmr.msrb.gmra.mxu3 %v4671_v48  ;;  %v2900_v3 = vld [vmem:[#allocation7 + $0x90] sm:$0xf0]  ;;  %v4168_v4 = vld [vmem:[#allocation7 + $0x184] sm:$0xf]  ;;  %v3303_v5 = vor.u32 %v4236_v60, %v3300_v61 }
  0x60   :  { %1848 = vmatpush.bf16.msra.mxu3 %v3335_v39  ;;  %v3028_v6 = vld [vmem:[#allocation7 + $0x190] sm:$0xf0]  ;;  %v4200_v7 = vld [vmem:[#allocation7 + $0x284] sm:$0xf]  ;;  %v2903_v12 = vor.u32 %v4136_v1, %v2900_v3 }
  0x61   :  { %1807 = vmatpush.bf16.msra.mxu0 %v2935_v49  ;;  %v3156_v8 = vld [vmem:[#allocation7 + $0x290] sm:$0xf0]  ;;  %v4232_v9 = vld [vmem:[#allocation7 + $0x384] sm:$0xf]  ;;  %v3031_v13 = vor.u32 %v4168_v4, %v3028_v6 }
  0x62   :  { %1821 = vmatpush.bf16.msra.mxu1 %v3063_v50  ;;  %v3284_v10 = vld [vmem:[#allocation7 + $0x390] sm:$0xf0]  ;;  %v3159_v14 = vor.u32 %v4200_v7, %v3156_v8  ;;  %v4132_v15 = vld [vmem:[#allocation7 + $0x64] sm:$0xf] }
  0x63   :  { %1835 = vmatpush.bf16.msra.mxu2 %v3191_v51  ;;  %v2884_v16 = vld [vmem:[#allocation7 + $0x70] sm:$0xf0]  ;;  %v4164_v17 = vld [vmem:[#allocation7 + $0x164] sm:$0xf]  ;;  %v3287_v19 = vor.u32 %v4232_v9, %v3284_v10 }
  0x64   :  { %1849 = vmatpush.bf16.msra.mxu3 %v3319_v55  ;;  %v3012_v20 = vld [vmem:[#allocation7 + $0x170] sm:$0xf0]  ;;  %v4196_v21 = vld [vmem:[#allocation7 + $0x264] sm:$0xf]  ;;  %v2887_v25 = vor.u32 %v4132_v15, %v2884_v16 }
  0x65   :  { %1808 = vmatpush.bf16.msra.mxu0 %v2919_v62  ;;  %v3140_v22 = vld [vmem:[#allocation7 + $0x270] sm:$0xf0]  ;;  %v4228_v23 = vld [vmem:[#allocation7 + $0x364] sm:$0xf]  ;;  %v3015_v26 = vor.u32 %v4164_v17, %v3012_v20 }
  0x66   :  { %1822 = vmatpush.bf16.msra.mxu1 %v3047_v63  ;;  %v3268_v24 = vld [vmem:[#allocation7 + $0x370] sm:$0xf0]  ;;  %v3143_v27 = vor.u32 %v4196_v21, %v3140_v22  ;;  %v4128_v28 = vld [vmem:[#allocation7 + $0x44] sm:$0xf] }
  0x67   :  { %1836 = vmatpush.bf16.msra.mxu2 %v3175_v0  ;;  %v2868_v29 = vld [vmem:[#allocation7 + $0x50] sm:$0xf0]  ;;  %v4160_v30 = vld [vmem:[#allocation7 + $0x144] sm:$0xf]  ;;  %v3271_v31 = vor.u32 %v4228_v23, %v3268_v24 }
  0x68   :  { %1850 = vmatpush.bf16.msra.mxu3 %v3303_v5  ;;  %v2996_v32 = vld [vmem:[#allocation7 + $0x150] sm:$0xf0]  ;;  %v4192_v33 = vld [vmem:[#allocation7 + $0x244] sm:$0xf]  ;;  %v2871_v37 = vor.u32 %v4128_v28, %v2868_v29 }
  0x69   :  { %1809 = vmatpush.bf16.msra.mxu0 %v2903_v12  ;;  %v3124_v34 = vld [vmem:[#allocation7 + $0x250] sm:$0xf0]  ;;  %v4224_v35 = vld [vmem:[#allocation7 + $0x344] sm:$0xf]  ;;  %v2999_v38 = vor.u32 %v4160_v30, %v2996_v32 }
  0x6a   :  { %1823 = vmatpush.bf16.msra.mxu1 %v3031_v13  ;;  %v3252_v36 = vld [vmem:[#allocation7 + $0x350] sm:$0xf0]  ;;  %v3127_v39 = vor.u32 %v4192_v33, %v3124_v34  ;;  %v4124_v41 = vld [vmem:[#allocation7 + $0x24] sm:$0xf] }
  0x6b   :  { %1837 = vmatpush.bf16.msra.mxu2 %v3159_v14  ;;  %v2852_v42 = vld [vmem:[#allocation7 + $0x30] sm:$0xf0]  ;;  %v4156_v43 = vld [vmem:[#allocation7 + $0x124] sm:$0xf]  ;;  %v3255_v46 = vor.u32 %v4224_v35, %v3252_v36 }
  0x6c   :  { %1851 = vmatpush.bf16.msra.mxu3 %v3287_v19  ;;  %v2980_v47 = vld [vmem:[#allocation7 + $0x130] sm:$0xf0]  ;;  %v4188_v49 = vld [vmem:[#allocation7 + $0x224] sm:$0xf]  ;;  %v2855_v53 = vor.u32 %v4124_v41, %v2852_v42 }
  0x6d   :  { %1810 = vmatpush.bf16.msra.mxu0 %v2887_v25  ;;  %v3108_v50 = vld [vmem:[#allocation7 + $0x230] sm:$0xf0]  ;;  %v4220_v51 = vld [vmem:[#allocation7 + $0x324] sm:$0xf]  ;;  %v2983_v56 = vor.u32 %v4156_v43, %v2980_v47 }
  0x6e   :  { %1824 = vmatpush.bf16.msra.mxu1 %v3015_v26  ;;  %v3236_v52 = vld [vmem:[#allocation7 + $0x330] sm:$0xf0]  ;;  %v4120_v54 = vld [vmem:[#allocation7 + $0x4] sm:$0xf]  ;;  %v3111_v57 = vor.u32 %v4188_v49, %v3108_v50 }
  0x6f   :  { %1838 = vmatpush.bf16.msra.mxu2 %v3143_v27  ;;  %v2836_v55 = vld [vmem:[#allocation7 + $0x10] sm:$0xf0]  ;;  %v4152_v58 = vld [vmem:[#allocation7 + $0x104] sm:$0xf]  ;;  %v3239_v62 = vor.u32 %v4220_v51, %v3236_v52 }
  0x70   :  { %1852 = vmatpush.bf16.msra.mxu3 %v3271_v31  ;;  %v2964_v60 = vld [vmem:[#allocation7 + $0x110] sm:$0xf0]  ;;  %v4184_v61 = vld [vmem:[#allocation7 + $0x204] sm:$0xf]  ;;  %v2839_v6 = vor.u32 %v4120_v54, %v2836_v55 }
  0x71   :  { %1811 = vmatpush.bf16.msra.mxu0 %v2871_v37  ;;  %v3092_v63 = vld [vmem:[#allocation7 + $0x210] sm:$0xf0]  ;;  %v4216_v0 = vld [vmem:[#allocation7 + $0x304] sm:$0xf]  ;;  %v2967_v10 = vor.u32 %v4152_v58, %v2964_v60 }
  0x72   :  { %1825 = vmatpush.bf16.msra.mxu1 %v2999_v38  ;;  %v3220_v1 = vld [vmem:[#allocation7 + $0x310] sm:$0xf0]  ;;  %v4276_v3 = vld [vmem:[#allocation7 + $0x4e4] sm:$0xf]  ;;  %v3095_v12 = vor.u32 %v4184_v61, %v3092_v63 }
  0x73   :  { %1839 = vmatpush.bf16.msra.mxu2 %v3127_v39  ;;  %v3460_v4 = vld [vmem:[#allocation7 + $0x4f0] sm:$0xf0]  ;;  %v4308_v5 = vld [vmem:[#allocation7 + $0x5e4] sm:$0xf]  ;;  %v3223_v15 = vor.u32 %v4216_v0, %v3220_v1 }
  0x74   :  { %1853 = vmatpush.bf16.msra.mxu3 %v3255_v46  ;;  %v3588_v7 = vld [vmem:[#allocation7 + $0x5f0] sm:$0xf0]  ;;  %v4340_v8 = vld [vmem:[#allocation7 + $0x6e4] sm:$0xf]  ;;  %v3463_v16 = vor.u32 %v4276_v3, %v3460_v4 }
  0x75   :  { %1812 = vmatpush.bf16.msra.mxu0 %v2855_v53  ;;  %v3716_v9 = vld [vmem:[#allocation7 + $0x6f0] sm:$0xf0]  ;;  %v4372_v13 = vld [vmem:[#allocation7 + $0x7e4] sm:$0xf]  ;;  %v3591_v17 = vor.u32 %v4308_v5, %v3588_v7 }
  0x76   :  { %1826 = vmatpush.bf16.msra.mxu1 %v2983_v56  ;;  %v3844_v14 = vld [vmem:[#allocation7 + $0x7f0] sm:$0xf0]  ;;  %v3719_v19 = vor.u32 %v4340_v8, %v3716_v9  ;;  %v4272_v20 = vld [vmem:[#allocation7 + $0x4c4] sm:$0xf] }
  0x77   :  { %1840 = vmatpush.bf16.msra.mxu2 %v3111_v57  ;;  %v3444_v21 = vld [vmem:[#allocation7 + $0x4d0] sm:$0xf0]  ;;  %v4304_v22 = vld [vmem:[#allocation7 + $0x5c4] sm:$0xf]  ;;  %v3847_v23 = vor.u32 %v4372_v13, %v3844_v14 }
  0x78   :  { %1854 = vmatpush.bf16.msra.mxu3 %v3239_v62  ;;  %v3572_v24 = vld [vmem:[#allocation7 + $0x5d0] sm:$0xf0]  ;;  %v4336_v25 = vld [vmem:[#allocation7 + $0x6c4] sm:$0xf]  ;;  %v3447_v29 = vor.u32 %v4272_v20, %v3444_v21 }
  0x79   :  { %1813 = vmatpush.bf16.msra.mxu0 %v2839_v6  ;;  %v3700_v26 = vld [vmem:[#allocation7 + $0x6d0] sm:$0xf0]  ;;  %v4368_v27 = vld [vmem:[#allocation7 + $0x7c4] sm:$0xf]  ;;  %v3575_v30 = vor.u32 %v4304_v22, %v3572_v24 }
  0x7a   :  { %1827 = vmatpush.bf16.msra.mxu1 %v2967_v10  ;;  %v3828_v28 = vld [vmem:[#allocation7 + $0x7d0] sm:$0xf0]  ;;  %v3703_v31 = vor.u32 %v4336_v25, %v3700_v26  ;;  %v4268_v32 = vld [vmem:[#allocation7 + $0x4a4] sm:$0xf] }
  0x7b   :  { %1841 = vmatpush.bf16.msra.mxu2 %v3095_v12  ;;  %v3428_v33 = vld [vmem:[#allocation7 + $0x4b0] sm:$0xf0]  ;;  %v4300_v34 = vld [vmem:[#allocation7 + $0x5a4] sm:$0xf]  ;;  %v3831_v35 = vor.u32 %v4368_v27, %v3828_v28 }
  0x7c   :  { %1855 = vmatpush.bf16.msra.mxu3 %v3223_v15  ;;  %v3556_v36 = vld [vmem:[#allocation7 + $0x5b0] sm:$0xf0]  ;;  %v4332_v37 = vld [vmem:[#allocation7 + $0x6a4] sm:$0xf]  ;;  %1814 = vmatmul.bf16.vlgmr.msra.gmra.mxu0 %v4653_v59  ;;  %v3431_v42 = vor.u32 %v4268_v32, %v3428_v33 }
  0x7d   :  { %1862 = vmatpush.bf16.msrb.mxu0 %v3463_v16  ;;  %v3684_v38 = vld [vmem:[#allocation7 + $0x6b0] sm:$0xf0]  ;;  %v4364_v39 = vld [vmem:[#allocation7 + $0x7a4] sm:$0xf]  ;;  %1828 = vmatmul.bf16.vlgmr.msra.gmra.mxu1 %v4659_v11  ;;  %v3559_v43 = vor.u32 %v4300_v34, %v3556_v36 }
  0x7e   :  { %1876 = vmatpush.bf16.msrb.mxu1 %v3591_v17  ;;  %v3812_v41 = vld [vmem:[#allocation7 + $0x7b0] sm:$0xf0]  ;;  %1842 = vmatmul.bf16.vlgmr.msra.gmra.mxu2 %v4655_v2  ;;  %v3687_v46 = vor.u32 %v4332_v37, %v3684_v38  ;;  %v4264_v47 = vld [vmem:[#allocation7 + $0x484] sm:$0xf] }
  0x7f   :  { %1890 = vmatpush.bf16.msrb.mxu2 %v3719_v19  ;;  %1856 = vmatmul.bf16.vlgmr.msra.gmra.mxu3 %v4661_v18  ;;  %v3412_v49 = vld [vmem:[#allocation7 + $0x490] sm:$0xf0]  ;;  %v4296_v50 = vld [vmem:[#allocation7 + $0x584] sm:$0xf]  ;;  %v3815_v51 = vor.u32 %v4364_v39, %v3812_v41 }
  0x80   :  { %1904 = vmatpush.bf16.msrb.mxu3 %v3847_v23  ;;  %v3540_v52 = vld [vmem:[#allocation7 + $0x590] sm:$0xf0]  ;;  %v4328_v53 = vld [vmem:[#allocation7 + $0x684] sm:$0xf]  ;;  %v3415_v57 = vor.u32 %v4264_v47, %v3412_v49  ;;  %v2954_v49 = vld [vmem:[#allocation7 + $0xe8] sm:$0xf] }
  0x81   :  { %1863 = vmatpush.bf16.msrb.mxu0 %v3447_v29  ;;  %v3668_v54 = vld [vmem:[#allocation7 + $0x690] sm:$0xf0]  ;;  %v4360_v55 = vld [vmem:[#allocation7 + $0x784] sm:$0xf]  ;;  %v3543_v58 = vor.u32 %v4296_v50, %v3540_v52  ;;  %v4151_v50 = vld [vmem:[#allocation7 + $0xf4] sm:$0xf0] }
  0x82   :  { %1877 = vmatpush.bf16.msrb.mxu1 %v3575_v30  ;;  %v3796_v56 = vld [vmem:[#allocation7 + $0x790] sm:$0xf0]  ;;  %v3671_v60 = vor.u32 %v4328_v53, %v3668_v54  ;;  %v4260_v61 = vld [vmem:[#allocation7 + $0x464] sm:$0xf]  ;;  %v4183_v53 = vld [vmem:[#allocation7 + $0x1f4] sm:$0xf0] }
  0x83   :  { %1891 = vmatpush.bf16.msrb.mxu2 %v3703_v31  ;;  %v3396_v62 = vld [vmem:[#allocation7 + $0x470] sm:$0xf0]  ;;  %v4292_v63 = vld [vmem:[#allocation7 + $0x564] sm:$0xf]  ;;  %v3799_v0 = vor.u32 %v4360_v55, %v3796_v56  ;;  %v3210_v54 = vld [vmem:[#allocation7 + $0x2e8] sm:$0xf] }
  0x84   :  { %1905 = vmatpush.bf16.msrb.mxu3 %v3831_v35  ;;  %v3524_v1 = vld [vmem:[#allocation7 + $0x570] sm:$0xf0]  ;;  %v4324_v3 = vld [vmem:[#allocation7 + $0x664] sm:$0xf]  ;;  %v3399_v7 = vor.u32 %v4260_v61, %v3396_v62  ;;  %v4215_v55 = vld [vmem:[#allocation7 + $0x2f4] sm:$0xf0]  ;;  %v2955_v62 = vor.u32 %v4151_v50, %v2954_v49 }
  0x85   :  { %1864 = vmatpush.bf16.msrb.mxu0 %v3431_v42  ;;  %v3652_v4 = vld [vmem:[#allocation7 + $0x670] sm:$0xf0]  ;;  %v4356_v5 = vld [vmem:[#allocation7 + $0x764] sm:$0xf]  ;;  %v3527_v8 = vor.u32 %v4292_v63, %v3524_v1  ;;  %v2938_v1 = vld [vmem:[#allocation7 + $0xc8] sm:$0xf] }
  0x86   :  { %1878 = vmatpush.bf16.msrb.mxu1 %v3559_v43  ;;  %v3780_v6 = vld [vmem:[#allocation7 + $0x770] sm:$0xf0]  ;;  %v3655_v9 = vor.u32 %v4324_v3, %v3652_v4  ;;  %v4256_v10 = vld [vmem:[#allocation7 + $0x444] sm:$0xf]  ;;  %v4147_v3 = vld [vmem:[#allocation7 + $0xd4] sm:$0xf0] }
  0x87   :  { %1892 = vmatpush.bf16.msrb.mxu2 %v3687_v46  ;;  %v3380_v12 = vld [vmem:[#allocation7 + $0x450] sm:$0xf0]  ;;  %v4288_v13 = vld [vmem:[#allocation7 + $0x544] sm:$0xf]  ;;  %v3783_v14 = vor.u32 %v4356_v5, %v3780_v6  ;;  %v3066_v4 = vld [vmem:[#allocation7 + $0x1c8] sm:$0xf] }
  0x88   :  { %1906 = vmatpush.bf16.msrb.mxu3 %v3815_v51  ;;  %v3508_v15 = vld [vmem:[#allocation7 + $0x550] sm:$0xf0]  ;;  %v4320_v16 = vld [vmem:[#allocation7 + $0x644] sm:$0xf]  ;;  %v3383_v21 = vor.u32 %v4256_v10, %v3380_v12  ;;  %v3082_v51 = vld [vmem:[#allocation7 + $0x1e8] sm:$0xf]  ;;  %v2939_v12 = vor.u32 %v4147_v3, %v2938_v1 }
  0x89   :  { %1865 = vmatpush.bf16.msrb.mxu0 %v3415_v57  ;;  %v3636_v17 = vld [vmem:[#allocation7 + $0x650] sm:$0xf0]  ;;  %v4352_v19 = vld [vmem:[#allocation7 + $0x744] sm:$0xf]  ;;  %v3511_v22 = vor.u32 %v4288_v13, %v3508_v15  ;;  %v3083_v63 = vor.u32 %v4183_v53, %v3082_v51  ;;  %v4179_v6 = vld [vmem:[#allocation7 + $0x1d4] sm:$0xf0] }
  0x8a   :  { %1879 = vmatpush.bf16.msrb.mxu1 %v3543_v58  ;;  %v3764_v20 = vld [vmem:[#allocation7 + $0x750] sm:$0xf0]  ;;  %v3639_v23 = vor.u32 %v4320_v16, %v3636_v17  ;;  %v4252_v24 = vld [vmem:[#allocation7 + $0x424] sm:$0xf]  ;;  %v3338_v58 = vld [vmem:[#allocation7 + $0x3e8] sm:$0xf]  ;;  %v3067_v13 = vor.u32 %v4179_v6, %v3066_v4 }
  0x8b   :  { %1893 = vmatpush.bf16.msrb.mxu2 %v3671_v60  ;;  %v3364_v25 = vld [vmem:[#allocation7 + $0x430] sm:$0xf0]  ;;  %v4284_v26 = vld [vmem:[#allocation7 + $0x524] sm:$0xf]  ;;  %v3767_v27 = vor.u32 %v4352_v19, %v3764_v20  ;;  %v4247_v60 = vld [vmem:[#allocation7 + $0x3f4] sm:$0xf0] }
  0x8c   :  { %1907 = vmatpush.bf16.msrb.mxu3 %v3799_v0  ;;  %v3492_v28 = vld [vmem:[#allocation7 + $0x530] sm:$0xf0]  ;;  %v4316_v29 = vld [vmem:[#allocation7 + $0x624] sm:$0xf]  ;;  %v3367_v33 = vor.u32 %v4252_v24, %v3364_v25  ;;  %v3211_v0 = vor.u32 %v4215_v55, %v3210_v54  ;;  %v3339_v5 = vor.u32 %v4247_v60, %v3338_v58  ;;  %v4243_v10 = vld [vmem:[#allocation7 + $0x3d4] sm:$0xf0] }
  0x8d   :  { %1866 = vmatpush.bf16.msrb.mxu0 %v3399_v7  ;;  %v3620_v30 = vld [vmem:[#allocation7 + $0x630] sm:$0xf0]  ;;  %v4348_v31 = vld [vmem:[#allocation7 + $0x724] sm:$0xf]  ;;  %v3495_v36 = vor.u32 %v4284_v26, %v3492_v28  ;;  %v3194_v7 = vld [vmem:[#allocation7 + $0x2c8] sm:$0xf] }
  0x8e   :  { %1880 = vmatpush.bf16.msrb.mxu1 %v3527_v8  ;;  %v3748_v32 = vld [vmem:[#allocation7 + $0x730] sm:$0xf0]  ;;  %v4248_v34 = vld [vmem:[#allocation7 + $0x404] sm:$0xf]  ;;  %v3623_v37 = vor.u32 %v4316_v29, %v3620_v30  ;;  %v4211_v8 = vld [vmem:[#allocation7 + $0x2d4] sm:$0xf0] }
  0x8f   :  { %1894 = vmatpush.bf16.msrb.mxu2 %v3655_v9  ;;  %v3348_v35 = vld [vmem:[#allocation7 + $0x410] sm:$0xf0]  ;;  %v4280_v38 = vld [vmem:[#allocation7 + $0x504] sm:$0xf]  ;;  %v3751_v42 = vor.u32 %v4348_v31, %v3748_v32  ;;  %v3322_v9 = vld [vmem:[#allocation7 + $0x3c8] sm:$0xf] }
  0x90   :  { %1908 = vmatpush.bf16.msrb.mxu3 %v3783_v14  ;;  %v3476_v39 = vld [vmem:[#allocation7 + $0x510] sm:$0xf0]  ;;  %v4312_v41 = vld [vmem:[#allocation7 + $0x604] sm:$0xf]  ;;  %v3351_v52 = vor.u32 %v4248_v34, %v3348_v35  ;;  %v3195_v14 = vor.u32 %v4211_v8, %v3194_v7  ;;  %v2922_v15 = vld [vmem:[#allocation7 + $0xa8] sm:$0xf]  ;;  %v3323_v19 = vor.u32 %v4243_v10, %v3322_v9 }
  0x91   :  { %1867 = vmatpush.bf16.msrb.mxu0 %v3383_v21  ;;  %v3604_v43 = vld [vmem:[#allocation7 + $0x610] sm:$0xf0]  ;;  %v4344_v46 = vld [vmem:[#allocation7 + $0x704] sm:$0xf]  ;;  %v3479_v56 = vor.u32 %v4280_v38, %v3476_v39  ;;  %v4143_v16 = vld [vmem:[#allocation7 + $0xb4] sm:$0xf0] }
  0x92   :  { %1881 = vmatpush.bf16.msrb.mxu1 %v3511_v22  ;;  %v3732_v47 = vld [vmem:[#allocation7 + $0x710] sm:$0xf0]  ;;  %v3607_v57 = vor.u32 %v4312_v41, %v3604_v43  ;;  %v3050_v17 = vld [vmem:[#allocation7 + $0x1a8] sm:$0xf]  ;;  %v4175_v20 = vld [vmem:[#allocation7 + $0x1b4] sm:$0xf0]  ;;  %v2923_v25 = vor.u32 %v4143_v16, %v2922_v15 }
  0x93   :  { %1895 = vmatpush.bf16.msrb.mxu2 %v3639_v23  ;;  %v3735_v61 = vor.u32 %v4344_v46, %v3732_v47  ;;  %v3178_v21 = vld [vmem:[#allocation7 + $0x2a8] sm:$0xf]  ;;  %v4207_v22 = vld [vmem:[#allocation7 + $0x2b4] sm:$0xf0]  ;;  %v3051_v26 = vor.u32 %v4175_v20, %v3050_v17 }
  0x94   :  { %1909 = vmatpush.bf16.msrb.mxu3 %v3767_v27  ;;  %v3306_v23 = vld [vmem:[#allocation7 + $0x3a8] sm:$0xf]  ;;  %v4239_v24 = vld [vmem:[#allocation7 + $0x3b4] sm:$0xf0]  ;;  %v3179_v27 = vor.u32 %v4207_v22, %v3178_v21 }
  0x95   :  { %1868 = vmatpush.bf16.msrb.mxu0 %v3367_v33  ;;  %v2906_v28 = vld [vmem:[#allocation7 + $0x88] sm:$0xf]  ;;  %v4139_v29 = vld [vmem:[#allocation7 + $0x94] sm:$0xf0]  ;;  %v3307_v31 = vor.u32 %v4239_v24, %v3306_v23 }
  0x96   :  { %1882 = vmatpush.bf16.msrb.mxu1 %v3495_v36  ;;  %v3034_v30 = vld [vmem:[#allocation7 + $0x188] sm:$0xf]  ;;  %v4171_v32 = vld [vmem:[#allocation7 + $0x194] sm:$0xf0] }
  0x97   :  { %1896 = vmatpush.bf16.msrb.mxu2 %v3623_v37  ;;  %v3162_v33 = vld [vmem:[#allocation7 + $0x288] sm:$0xf]  ;;  %v4203_v34 = vld [vmem:[#allocation7 + $0x294] sm:$0xf0]  ;;  %v2907_v37 = vor.u32 %v4139_v29, %v2906_v28  ;;  %v3035_v38 = vor.u32 %v4171_v32, %v3034_v30 }
  0x98   :  { %1910 = vmatpush.bf16.msrb.mxu3 %v3751_v42  ;;  %v3290_v35 = vld [vmem:[#allocation7 + $0x388] sm:$0xf]  ;;  %v4235_v36 = vld [vmem:[#allocation7 + $0x394] sm:$0xf0]  ;;  %v3163_v39 = vor.u32 %v4203_v34, %v3162_v33 }
  0x99   :  { %1869 = vmatpush.bf16.msrb.mxu0 %v3351_v52  ;;  %v2890_v41 = vld [vmem:[#allocation7 + $0x68] sm:$0xf]  ;;  %v4135_v42 = vld [vmem:[#allocation7 + $0x74] sm:$0xf0]  ;;  %v3291_v46 = vor.u32 %v4235_v36, %v3290_v35 }
  0x9a   :  { %1883 = vmatpush.bf16.msrb.mxu1 %v3479_v56  ;;  %v3018_v43 = vld [vmem:[#allocation7 + $0x168] sm:$0xf]  ;;  %v4167_v47 = vld [vmem:[#allocation7 + $0x174] sm:$0xf0]  ;;  %v2891_v53 = vor.u32 %v4135_v42, %v2890_v41 }
  0x9b   :  { %1897 = vmatpush.bf16.msrb.mxu2 %v3607_v57  ;;  %v3146_v49 = vld [vmem:[#allocation7 + $0x268] sm:$0xf]  ;;  %v4199_v50 = vld [vmem:[#allocation7 + $0x274] sm:$0xf0]  ;;  %v3019_v54 = vor.u32 %v4167_v47, %v3018_v43 }
  0x9c   :  { %1911 = vmatpush.bf16.msrb.mxu3 %v3735_v61  ;;  %1870 = vmatmul.bf16.vlgmr.msrb.gmra.mxu0 %v4665_v40  ;;  %v3274_v51 = vld [vmem:[#allocation7 + $0x368] sm:$0xf]  ;;  %v4231_v52 = vld [vmem:[#allocation7 + $0x374] sm:$0xf0]  ;;  %v3147_v55 = vor.u32 %v4199_v50, %v3146_v49 }
  0x9d   :  { %1918 = vmatpush.bf16.msra.mxu0 %v2955_v62  ;;  %1884 = vmatmul.bf16.vlgmr.msrb.gmra.mxu1 %v4669_v45  ;;  %v2874_v56 = vld [vmem:[#allocation7 + $0x48] sm:$0xf]  ;;  %v4131_v57 = vld [vmem:[#allocation7 + $0x54] sm:$0xf0]  ;;  %v3275_v60 = vor.u32 %v4231_v52, %v3274_v51 }
  0x9e   :  { %1932 = vmatpush.bf16.msra.mxu1 %v3083_v63  ;;  %1898 = vmatmul.bf16.vlgmr.msrb.gmra.mxu2 %v4667_v44  ;;  %v3002_v58 = vld [vmem:[#allocation7 + $0x148] sm:$0xf]  ;;  %v4163_v61 = vld [vmem:[#allocation7 + $0x154] sm:$0xf0]  ;;  %v2875_v3 = vor.u32 %v4131_v57, %v2874_v56 }
  0x9f   :  { %1946 = vmatpush.bf16.msra.mxu2 %v3211_v0  ;;  %1912 = vmatmul.bf16.vlgmr.msrb.gmra.mxu3 %v4671_v48  ;;  %v3130_v62 = vld [vmem:[#allocation7 + $0x248] sm:$0xf]  ;;  %v4195_v63 = vld [vmem:[#allocation7 + $0x254] sm:$0xf0]  ;;  %v3003_v4 = vor.u32 %v4163_v61, %v3002_v58 }
  0xa0   :  { %1960 = vmatpush.bf16.msra.mxu3 %v3339_v5  ;;  %v3258_v0 = vld [vmem:[#allocation7 + $0x348] sm:$0xf]  ;;  %v4227_v1 = vld [vmem:[#allocation7 + $0x354] sm:$0xf0]  ;;  %v3131_v5 = vor.u32 %v4195_v63, %v3130_v62 }
  0xa1   :  { %1919 = vmatpush.bf16.msra.mxu0 %v2939_v12  ;;  %v2858_v6 = vld [vmem:[#allocation7 + $0x28] sm:$0xf]  ;;  %v4127_v7 = vld [vmem:[#allocation7 + $0x34] sm:$0xf0]  ;;  %v3259_v9 = vor.u32 %v4227_v1, %v3258_v0 }
  0xa2   :  { %1933 = vmatpush.bf16.msra.mxu1 %v3067_v13  ;;  %v2986_v8 = vld [vmem:[#allocation7 + $0x128] sm:$0xf]  ;;  %v4159_v10 = vld [vmem:[#allocation7 + $0x134] sm:$0xf0]  ;;  %v2859_v16 = vor.u32 %v4127_v7, %v2858_v6 }
  0xa3   :  { %1947 = vmatpush.bf16.msra.mxu2 %v3195_v14  ;;  %v3114_v12 = vld [vmem:[#allocation7 + $0x228] sm:$0xf]  ;;  %v4191_v13 = vld [vmem:[#allocation7 + $0x234] sm:$0xf0]  ;;  %v2987_v20 = vor.u32 %v4159_v10, %v2986_v8 }
  0xa4   :  { %1961 = vmatpush.bf16.msra.mxu3 %v3323_v19  ;;  %v3242_v14 = vld [vmem:[#allocation7 + $0x328] sm:$0xf]  ;;  %v4223_v15 = vld [vmem:[#allocation7 + $0x334] sm:$0xf0]  ;;  %v3115_v21 = vor.u32 %v4191_v13, %v3114_v12 }
  0xa5   :  { %1920 = vmatpush.bf16.msra.mxu0 %v2923_v25  ;;  %v2842_v17 = vld [vmem:[#allocation7 + $0x8] sm:$0xf]  ;;  %v4123_v19 = vld [vmem:[#allocation7 + $0x14] sm:$0xf0]  ;;  %v3243_v25 = vor.u32 %v4223_v15, %v3242_v14 }
  0xa6   :  { %1934 = vmatpush.bf16.msra.mxu1 %v3051_v26  ;;  %v2970_v22 = vld [vmem:[#allocation7 + $0x108] sm:$0xf]  ;;  %v4155_v23 = vld [vmem:[#allocation7 + $0x114] sm:$0xf0]  ;;  %v2843_v32 = vor.u32 %v4123_v19, %v2842_v17 }
  0xa7   :  { %1948 = vmatpush.bf16.msra.mxu2 %v3179_v27  ;;  %v3098_v24 = vld [vmem:[#allocation7 + $0x208] sm:$0xf]  ;;  %v4187_v26 = vld [vmem:[#allocation7 + $0x214] sm:$0xf0]  ;;  %v2971_v36 = vor.u32 %v4155_v23, %v2970_v22 }
  0xa8   :  { %1962 = vmatpush.bf16.msra.mxu3 %v3307_v31  ;;  %v3226_v27 = vld [vmem:[#allocation7 + $0x308] sm:$0xf]  ;;  %v4219_v28 = vld [vmem:[#allocation7 + $0x314] sm:$0xf0] }
  0xa9   :  { %1921 = vmatpush.bf16.msra.mxu0 %v2907_v37  ;;  %v3466_v29 = vld [vmem:[#allocation7 + $0x4e8] sm:$0xf]  ;;  %v4279_v30 = vld [vmem:[#allocation7 + $0x4f4] sm:$0xf0]  ;;  %v3099_v37 = vor.u32 %v4187_v26, %v3098_v24  ;;  %v3227_v41 = vor.u32 %v4219_v28, %v3226_v27 }
  0xaa   :  { %1935 = vmatpush.bf16.msra.mxu1 %v3035_v38  ;;  %v3594_v31 = vld [vmem:[#allocation7 + $0x5e8] sm:$0xf]  ;;  %v4311_v33 = vld [vmem:[#allocation7 + $0x5f4] sm:$0xf0]  ;;  %v3467_v42 = vor.u32 %v4279_v30, %v3466_v29 }
  0xab   :  { %1949 = vmatpush.bf16.msra.mxu2 %v3163_v39  ;;  %v3722_v34 = vld [vmem:[#allocation7 + $0x6e8] sm:$0xf]  ;;  %v4343_v35 = vld [vmem:[#allocation7 + $0x6f4] sm:$0xf0]  ;;  %v3595_v43 = vor.u32 %v4311_v33, %v3594_v31 }
  0xac   :  { %1963 = vmatpush.bf16.msra.mxu3 %v3291_v46  ;;  %v3850_v38 = vld [vmem:[#allocation7 + $0x7e8] sm:$0xf]  ;;  %v4375_v39 = vld [vmem:[#allocation7 + $0x7f4] sm:$0xf0]  ;;  %v3723_v46 = vor.u32 %v4343_v35, %v3722_v34 }
  0xad   :  { %1922 = vmatpush.bf16.msra.mxu0 %v2891_v53  ;;  %v3450_v47 = vld [vmem:[#allocation7 + $0x4c8] sm:$0xf]  ;;  %v4275_v49 = vld [vmem:[#allocation7 + $0x4d4] sm:$0xf0]  ;;  %v3851_v51 = vor.u32 %v4375_v39, %v3850_v38 }
  0xae   :  { %1936 = vmatpush.bf16.msra.mxu1 %v3019_v54  ;;  %v3578_v50 = vld [vmem:[#allocation7 + $0x5c8] sm:$0xf]  ;;  %v4307_v52 = vld [vmem:[#allocation7 + $0x5d4] sm:$0xf0]  ;;  %v3451_v57 = vor.u32 %v4275_v49, %v3450_v47 }
  0xaf   :  { %1950 = vmatpush.bf16.msra.mxu2 %v3147_v55  ;;  %v3706_v53 = vld [vmem:[#allocation7 + $0x6c8] sm:$0xf]  ;;  %v4339_v54 = vld [vmem:[#allocation7 + $0x6d4] sm:$0xf0]  ;;  %v3579_v58 = vor.u32 %v4307_v52, %v3578_v50 }
  0xb0   :  { %1964 = vmatpush.bf16.msra.mxu3 %v3275_v60  ;;  %v3834_v55 = vld [vmem:[#allocation7 + $0x7c8] sm:$0xf]  ;;  %v4371_v56 = vld [vmem:[#allocation7 + $0x7d4] sm:$0xf0]  ;;  %v3707_v60 = vor.u32 %v4339_v54, %v3706_v53 }
  0xb1   :  { %1923 = vmatpush.bf16.msra.mxu0 %v2875_v3  ;;  %v3434_v61 = vld [vmem:[#allocation7 + $0x4a8] sm:$0xf]  ;;  %v4271_v62 = vld [vmem:[#allocation7 + $0x4b4] sm:$0xf0]  ;;  %v3835_v0 = vor.u32 %v4371_v56, %v3834_v55 }
  0xb2   :  { %1937 = vmatpush.bf16.msra.mxu1 %v3003_v4  ;;  %v3562_v63 = vld [vmem:[#allocation7 + $0x5a8] sm:$0xf]  ;;  %v4303_v1 = vld [vmem:[#allocation7 + $0x5b4] sm:$0xf0]  ;;  %v3435_v7 = vor.u32 %v4271_v62, %v3434_v61 }
  0xb3   :  { %1951 = vmatpush.bf16.msra.mxu2 %v3131_v5  ;;  %v3690_v3 = vld [vmem:[#allocation7 + $0x6a8] sm:$0xf]  ;;  %v4335_v4 = vld [vmem:[#allocation7 + $0x6b4] sm:$0xf0]  ;;  %v3563_v8 = vor.u32 %v4303_v1, %v3562_v63 }
  0xb4   :  { %1965 = vmatpush.bf16.msra.mxu3 %v3259_v9  ;;  %v3818_v5 = vld [vmem:[#allocation7 + $0x7a8] sm:$0xf]  ;;  %v4367_v6 = vld [vmem:[#allocation7 + $0x7b4] sm:$0xf0]  ;;  %v3691_v9 = vor.u32 %v4335_v4, %v3690_v3 }
  0xb5   :  { %1924 = vmatpush.bf16.msra.mxu0 %v2859_v16  ;;  %v3418_v10 = vld [vmem:[#allocation7 + $0x488] sm:$0xf]  ;;  %v4267_v12 = vld [vmem:[#allocation7 + $0x494] sm:$0xf0]  ;;  %v3819_v14 = vor.u32 %v4367_v6, %v3818_v5 }
  0xb6   :  { %1938 = vmatpush.bf16.msra.mxu1 %v2987_v20  ;;  %v3546_v13 = vld [vmem:[#allocation7 + $0x588] sm:$0xf]  ;;  %v4299_v15 = vld [vmem:[#allocation7 + $0x594] sm:$0xf0] }
  0xb7   :  { %1952 = vmatpush.bf16.msra.mxu2 %v3115_v21  ;;  %v3674_v16 = vld [vmem:[#allocation7 + $0x688] sm:$0xf]  ;;  %v4331_v17 = vld [vmem:[#allocation7 + $0x694] sm:$0xf0]  ;;  %v3419_v21 = vor.u32 %v4267_v12, %v3418_v10  ;;  %v3547_v22 = vor.u32 %v4299_v15, %v3546_v13  ;;  %v4149_v12 = vld [vmem:[#allocation7 + $0xec] sm:$0xf] }
  0xb8   :  { %1966 = vmatpush.bf16.msra.mxu3 %v3243_v25  ;;  %v3802_v19 = vld [vmem:[#allocation7 + $0x788] sm:$0xf]  ;;  %v4363_v20 = vld [vmem:[#allocation7 + $0x794] sm:$0xf0]  ;;  %v3675_v23 = vor.u32 %v4331_v17, %v3674_v16  ;;  %v2956_v13 = vld [vmem:[#allocation7 + $0xf8] sm:$0xf0] }
  0xb9   :  { %1925 = vmatpush.bf16.msra.mxu0 %v2843_v32  ;;  %v3402_v24 = vld [vmem:[#allocation7 + $0x468] sm:$0xf]  ;;  %v4263_v25 = vld [vmem:[#allocation7 + $0x474] sm:$0xf0]  ;;  %v3803_v27 = vor.u32 %v4363_v20, %v3802_v19  ;;  %v3084_v16 = vld [vmem:[#allocation7 + $0x1f8] sm:$0xf0] }
  0xba   :  { %1939 = vmatpush.bf16.msra.mxu1 %v2971_v36  ;;  %v3530_v26 = vld [vmem:[#allocation7 + $0x568] sm:$0xf]  ;;  %v4295_v28 = vld [vmem:[#allocation7 + $0x574] sm:$0xf0]  ;;  %v3403_v33 = vor.u32 %v4263_v25, %v3402_v24  ;;  %v4213_v17 = vld [vmem:[#allocation7 + $0x2ec] sm:$0xf]  ;;  %v2959_v25 = vor.u32 %v4149_v12, %v2956_v13 }
  0xbb   :  { %1953 = vmatpush.bf16.msra.mxu2 %v3099_v37  ;;  %v3658_v29 = vld [vmem:[#allocation7 + $0x668] sm:$0xf]  ;;  %v4327_v30 = vld [vmem:[#allocation7 + $0x674] sm:$0xf0]  ;;  %v3531_v34 = vor.u32 %v4295_v28, %v3530_v26  ;;  %v3212_v19 = vld [vmem:[#allocation7 + $0x2f8] sm:$0xf0] }
  0xbc   :  { %1967 = vmatpush.bf16.msra.mxu3 %v3227_v41  ;;  %1926 = vmatmul.bf16.vlgmr.msra.gmra.mxu0 %v4653_v59  ;;  %v3786_v31 = vld [vmem:[#allocation7 + $0x768] sm:$0xf]  ;;  %v4359_v32 = vld [vmem:[#allocation7 + $0x774] sm:$0xf0]  ;;  %v3659_v35 = vor.u32 %v4327_v30, %v3658_v29  ;;  %v4145_v28 = vld [vmem:[#allocation7 + $0xcc] sm:$0xf] }
  0xbd   :  { %1974 = vmatpush.bf16.msrb.mxu0 %v3467_v42  ;;  %1940 = vmatmul.bf16.vlgmr.msra.gmra.mxu1 %v4659_v11  ;;  %v3386_v36 = vld [vmem:[#allocation7 + $0x448] sm:$0xf]  ;;  %v4259_v37 = vld [vmem:[#allocation7 + $0x454] sm:$0xf0]  ;;  %v3787_v39 = vor.u32 %v4359_v32, %v3786_v31  ;;  %v2940_v29 = vld [vmem:[#allocation7 + $0xd8] sm:$0xf0] }
  0xbe   :  { %1988 = vmatpush.bf16.msrb.mxu1 %v3595_v43  ;;  %1954 = vmatmul.bf16.vlgmr.msra.gmra.mxu2 %v4655_v2  ;;  %v3514_v38 = vld [vmem:[#allocation7 + $0x548] sm:$0xf]  ;;  %v4291_v41 = vld [vmem:[#allocation7 + $0x554] sm:$0xf0]  ;;  %v3387_v49 = vor.u32 %v4259_v37, %v3386_v36  ;;  %v4177_v30 = vld [vmem:[#allocation7 + $0x1cc] sm:$0xf]  ;;  %v2943_v37 = vor.u32 %v4145_v28, %v2940_v29 }
  0xbf   :  { %2002 = vmatpush.bf16.msrb.mxu2 %v3723_v46  ;;  %1968 = vmatmul.bf16.vlgmr.msra.gmra.mxu3 %v4661_v18  ;;  %v3642_v42 = vld [vmem:[#allocation7 + $0x648] sm:$0xf]  ;;  %v4323_v43 = vld [vmem:[#allocation7 + $0x654] sm:$0xf0]  ;;  %v3515_v50 = vor.u32 %v4291_v41, %v3514_v38  ;;  %v3068_v32 = vld [vmem:[#allocation7 + $0x1d8] sm:$0xf0] }
  0xc0   :  { %2016 = vmatpush.bf16.msrb.mxu3 %v3851_v51  ;;  %v3770_v46 = vld [vmem:[#allocation7 + $0x748] sm:$0xf]  ;;  %v4355_v47 = vld [vmem:[#allocation7 + $0x754] sm:$0xf0]  ;;  %v3643_v51 = vor.u32 %v4323_v43, %v3642_v42  ;;  %v3324_v36 = vld [vmem:[#allocation7 + $0x3d8] sm:$0xf0]  ;;  %v3071_v38 = vor.u32 %v4177_v30, %v3068_v32 }
  0xc1   :  { %1975 = vmatpush.bf16.msrb.mxu0 %v3451_v57  ;;  %v3370_v52 = vld [vmem:[#allocation7 + $0x428] sm:$0xf]  ;;  %v4255_v53 = vld [vmem:[#allocation7 + $0x434] sm:$0xf0]  ;;  %v3771_v55 = vor.u32 %v4355_v47, %v3770_v46  ;;  %v4141_v41 = vld [vmem:[#allocation7 + $0xac] sm:$0xf] }
  0xc2   :  { %1989 = vmatpush.bf16.msrb.mxu1 %v3579_v58  ;;  %v3498_v54 = vld [vmem:[#allocation7 + $0x528] sm:$0xf]  ;;  %v4287_v56 = vld [vmem:[#allocation7 + $0x534] sm:$0xf0]  ;;  %v3371_v62 = vor.u32 %v4255_v53, %v3370_v52  ;;  %v2924_v42 = vld [vmem:[#allocation7 + $0xb8] sm:$0xf0] }
  0xc3   :  { %2003 = vmatpush.bf16.msrb.mxu2 %v3707_v60  ;;  %v3626_v57 = vld [vmem:[#allocation7 + $0x628] sm:$0xf]  ;;  %v4319_v58 = vld [vmem:[#allocation7 + $0x634] sm:$0xf0]  ;;  %v3499_v1 = vor.u32 %v4287_v56, %v3498_v54  ;;  %v4173_v43 = vld [vmem:[#allocation7 + $0x1ac] sm:$0xf]  ;;  %v2927_v53 = vor.u32 %v4141_v41, %v2924_v42 }
  0xc4   :  { %2017 = vmatpush.bf16.msrb.mxu3 %v3835_v0  ;;  %v3754_v60 = vld [vmem:[#allocation7 + $0x728] sm:$0xf]  ;;  %v4351_v61 = vld [vmem:[#allocation7 + $0x734] sm:$0xf0]  ;;  %v3627_v3 = vor.u32 %v4319_v58, %v3626_v57  ;;  %v3052_v47 = vld [vmem:[#allocation7 + $0x1b8] sm:$0xf0] }
  0xc5   :  { %1976 = vmatpush.bf16.msrb.mxu0 %v3435_v7  ;;  %v3354_v63 = vld [vmem:[#allocation7 + $0x408] sm:$0xf]  ;;  %v4251_v0 = vld [vmem:[#allocation7 + $0x414] sm:$0xf0]  ;;  %v3755_v7 = vor.u32 %v4351_v61, %v3754_v60  ;;  %v3308_v52 = vld [vmem:[#allocation7 + $0x3b8] sm:$0xf0]  ;;  %v3055_v54 = vor.u32 %v4173_v43, %v3052_v47 }
  0xc6   :  { %1990 = vmatpush.bf16.msrb.mxu1 %v3563_v8  ;;  %v3482_v4 = vld [vmem:[#allocation7 + $0x508] sm:$0xf]  ;;  %v4283_v5 = vld [vmem:[#allocation7 + $0x514] sm:$0xf0]  ;;  %v3355_v15 = vor.u32 %v4251_v0, %v3354_v63  ;;  %v4137_v56 = vld [vmem:[#allocation7 + $0x8c] sm:$0xf] }
  0xc7   :  { %2004 = vmatpush.bf16.msrb.mxu2 %v3691_v9  ;;  %v3610_v6 = vld [vmem:[#allocation7 + $0x608] sm:$0xf]  ;;  %v4315_v8 = vld [vmem:[#allocation7 + $0x614] sm:$0xf0]  ;;  %v3483_v20 = vor.u32 %v4283_v5, %v3482_v4  ;;  %v2908_v57 = vld [vmem:[#allocation7 + $0x98] sm:$0xf0]  ;;  %v4693_v4 = vpop.f32.mrf.mxu0 }
  0xc8   :  { %2018 = vmatpush.bf16.msrb.mxu3 %v3819_v14  ;;  %v3738_v9 = vld [vmem:[#allocation7 + $0x708] sm:$0xf]  ;;  %v4347_v10 = vld [vmem:[#allocation7 + $0x714] sm:$0xf0]  ;;  %v4181_v14 = vld [vmem:[#allocation7 + $0x1ec] sm:$0xf] }
  0xc9   :  { %1977 = vmatpush.bf16.msrb.mxu0 %v3419_v21  ;;  %v3611_v21 = vor.u32 %v4315_v8, %v3610_v6  ;;  %v3739_v24 = vor.u32 %v4347_v10, %v3738_v9  ;;  %v3087_v26 = vor.u32 %v4181_v14, %v3084_v16  ;;  %v4169_v58 = vld [vmem:[#allocation7 + $0x18c] sm:$0xf]  ;;  %v3036_v61 = vld [vmem:[#allocation7 + $0x198] sm:$0xf0]  ;;  %v4695_v10 = vpop.f32.mrf.mxu1 }
  0xca   :  { %1991 = vmatpush.bf16.msrb.mxu1 %v3547_v22  ;;  %v4245_v22 = vld [vmem:[#allocation7 + $0x3ec] sm:$0xf]  ;;  %v3164_v63 = vld [vmem:[#allocation7 + $0x298] sm:$0xf0]  ;;  %v3039_v5 = vor.u32 %v4169_v58, %v3036_v61 }
  0xcb   :  { %2005 = vmatpush.bf16.msrb.mxu2 %v3675_v23  ;;  %v3340_v23 = vld [vmem:[#allocation7 + $0x3f8] sm:$0xf0]  ;;  %v4233_v0 = vld [vmem:[#allocation7 + $0x38c] sm:$0xf] }
  0xcc   :  { %2019 = vmatpush.bf16.msrb.mxu3 %v3803_v27  ;;  %v3215_v27 = vor.u32 %v4213_v17, %v3212_v19  ;;  %v3343_v31 = vor.u32 %v4245_v22, %v3340_v23  ;;  %v2892_v8 = vld [vmem:[#allocation7 + $0x78] sm:$0xf0]  ;;  %v4165_v9 = vld [vmem:[#allocation7 + $0x16c] sm:$0xf] }
  0xcd   :  { %1978 = vmatpush.bf16.msrb.mxu0 %v3403_v33  ;;  %v4209_v33 = vld [vmem:[#allocation7 + $0x2cc] sm:$0xf]  ;;  %v3020_v13 = vld [vmem:[#allocation7 + $0x178] sm:$0xf0] }
  0xce   :  { %1992 = vmatpush.bf16.msrb.mxu1 %v3531_v34  ;;  %v3196_v34 = vld [vmem:[#allocation7 + $0x2d8] sm:$0xf0]  ;;  %v4197_v14 = vld [vmem:[#allocation7 + $0x26c] sm:$0xf] }
  0xcf   :  { %2006 = vmatpush.bf16.msrb.mxu2 %v3659_v35  ;;  %v4241_v35 = vld [vmem:[#allocation7 + $0x3cc] sm:$0xf]  ;;  %v3276_v17 = vld [vmem:[#allocation7 + $0x378] sm:$0xf0] }
  0xd0   :  { %2020 = vmatpush.bf16.msrb.mxu3 %v3787_v39  ;;  %v3199_v39 = vor.u32 %v4209_v33, %v3196_v34  ;;  %v3327_v46 = vor.u32 %v4241_v35, %v3324_v36  ;;  %v4229_v16 = vld [vmem:[#allocation7 + $0x36c] sm:$0xf]  ;;  %v2876_v23 = vld [vmem:[#allocation7 + $0x58] sm:$0xf0]  ;;  %v4699_v33 = vpop.f32.mrf.mxu3 }
  0xd1   :  { %1979 = vmatpush.bf16.msrb.mxu0 %v3387_v49  ;;  %v4205_v49 = vld [vmem:[#allocation7 + $0x2ac] sm:$0xf]  ;;  %v3132_v28 = vld [vmem:[#allocation7 + $0x258] sm:$0xf0] }
  0xd2   :  { %1993 = vmatpush.bf16.msrb.mxu1 %v3515_v50  ;;  %v3180_v50 = vld [vmem:[#allocation7 + $0x2b8] sm:$0xf0]  ;;  %v4129_v22 = vld [vmem:[#allocation7 + $0x4c] sm:$0xf] }
  0xd3   :  { %2007 = vmatpush.bf16.msrb.mxu2 %v3643_v51  ;;  %v4237_v51 = vld [vmem:[#allocation7 + $0x3ac] sm:$0xf]  ;;  %v3260_v30 = vld [vmem:[#allocation7 + $0x358] sm:$0xf0]  ;;  %v2879_v32 = vor.u32 %v4129_v22, %v2876_v23 }
  0xd4   :  { %2021 = vmatpush.bf16.msrb.mxu3 %v3771_v55  ;;  %v3183_v55 = vor.u32 %v4205_v49, %v3180_v50  ;;  %v3311_v60 = vor.u32 %v4237_v51, %v3308_v52  ;;  %v4225_v29 = vld [vmem:[#allocation7 + $0x34c] sm:$0xf]  ;;  %v2988_v41 = vld [vmem:[#allocation7 + $0x138] sm:$0xf0]  ;;  %v4703_v50 = vpop.f32.mrf.mxu1 }
  0xd5   :  { %1980 = vmatpush.bf16.msrb.mxu0 %v3371_v62  ;;  %v4201_v62 = vld [vmem:[#allocation7 + $0x28c] sm:$0xf]  ;;  %v3116_v43 = vld [vmem:[#allocation7 + $0x238] sm:$0xf0] }
  0xd6   :  { %1994 = vmatpush.bf16.msrb.mxu1 %v3499_v1  ;;  %v3292_v1 = vld [vmem:[#allocation7 + $0x398] sm:$0xf0]  ;;  %v3167_v6 = vor.u32 %v4201_v62, %v3164_v63  ;;  %v4125_v36 = vld [vmem:[#allocation7 + $0x2c] sm:$0xf] }
  0xd7   :  { %2008 = vmatpush.bf16.msrb.mxu2 %v3627_v3  ;;  %v2911_v3 = vor.u32 %v4137_v56, %v2908_v57  ;;  %v3295_v12 = vor.u32 %v4233_v0, %v3292_v1  ;;  %v4189_v42 = vld [vmem:[#allocation7 + $0x22c] sm:$0xf]  ;;  %v3244_v49 = vld [vmem:[#allocation7 + $0x338] sm:$0xf0] }
  0xd8   :  { %2022 = vmatpush.bf16.msrb.mxu3 %v3755_v7  ;;  %v4133_v7 = vld [vmem:[#allocation7 + $0x6c] sm:$0xf]  ;;  %v2972_v57 = vld [vmem:[#allocation7 + $0x118] sm:$0xf0] }
  0xd9   :  { %1981 = vmatpush.bf16.msrb.mxu0 %v3355_v15  ;;  %v3148_v15 = vld [vmem:[#allocation7 + $0x278] sm:$0xf0]  ;;  %v2895_v19 = vor.u32 %v4133_v7, %v2892_v8  ;;  %v4221_v47 = vld [vmem:[#allocation7 + $0x32c] sm:$0xf] }
  0xda   :  { %1995 = vmatpush.bf16.msrb.mxu1 %v3483_v20  ;;  %v3023_v20 = vor.u32 %v4165_v9, %v3020_v13  ;;  %v4121_v52 = vld [vmem:[#allocation7 + $0xc] sm:$0xf]  ;;  %v3100_v61 = vld [vmem:[#allocation7 + $0x218] sm:$0xf0] }
  0xdb   :  { %2009 = vmatpush.bf16.msrb.mxu2 %v3611_v21  ;;  %v3151_v21 = vor.u32 %v4197_v14, %v3148_v15  ;;  %v4153_v56 = vld [vmem:[#allocation7 + $0x10c] sm:$0xf]  ;;  %v3228_v63 = vld [vmem:[#allocation7 + $0x318] sm:$0xf0] }
  0xdc   :  { %2023 = vmatpush.bf16.msrb.mxu3 %v3739_v24  ;;  %1982 = vmatmul.bf16.vlgmr.msrb.gmra.mxu0 %v4665_v40  ;;  %v4161_v24 = vld [vmem:[#allocation7 + $0x14c] sm:$0xf]  ;;  %v3468_v1 = vld [vmem:[#allocation7 + $0x4f8] sm:$0xf0]  ;;  %v2975_v9 = vor.u32 %v4153_v56, %v2972_v57 }
  0xdd   :  { %2030 = vmatpush.bf16.msra.mxu0 %v2959_v25  ;;  %1996 = vmatmul.bf16.vlgmr.msrb.gmra.mxu1 %v4669_v45  ;;  %v3279_v25 = vor.u32 %v4229_v16, %v3276_v17  ;;  %v4185_v58 = vld [vmem:[#allocation7 + $0x20c] sm:$0xf]  ;;  %v3724_v8 = vld [vmem:[#allocation7 + $0x6f8] sm:$0xf0] }
  0xde   :  { %2044 = vmatpush.bf16.msra.mxu1 %v3087_v26  ;;  %2010 = vmatmul.bf16.vlgmr.msrb.gmra.mxu2 %v4667_v44  ;;  %v3004_v26 = vld [vmem:[#allocation7 + $0x158] sm:$0xf0]  ;;  %v4217_v62 = vld [vmem:[#allocation7 + $0x30c] sm:$0xf] }
  0xdf   :  { %2058 = vmatpush.bf16.msra.mxu2 %v3215_v27  ;;  %2024 = vmatmul.bf16.vlgmr.msrb.gmra.mxu3 %v4671_v48  ;;  %v4193_v27 = vld [vmem:[#allocation7 + $0x24c] sm:$0xf]  ;;  %v3007_v34 = vor.u32 %v4161_v24, %v3004_v26  ;;  %v3852_v14 = vld [vmem:[#allocation7 + $0x7f8] sm:$0xf0]  ;;  %v3231_v16 = vor.u32 %v4217_v62, %v3228_v63 }
  0xe0   :  { %2072 = vmatpush.bf16.msra.mxu3 %v3343_v31  ;;  %v4697_v31 = vpop.f32.mrf.mxu2  ;;  %v3135_v35 = vor.u32 %v4193_v27, %v3132_v28  ;;  %v4277_v0 = vld [vmem:[#allocation7 + $0x4ec] sm:$0xf]  ;;  %v3452_v23 = vld [vmem:[#allocation7 + $0x4d8] sm:$0xf0] }
  0xe1   :  { %2031 = vmatpush.bf16.msra.mxu0 %v2943_v37  ;;  %v2860_v37 = vld [vmem:[#allocation7 + $0x38] sm:$0xf0]  ;;  %v4341_v7 = vld [vmem:[#allocation7 + $0x6ec] sm:$0xf]  ;;  %v3471_v17 = vor.u32 %v4277_v0, %v3468_v1 }
  0xe2   :  { %2045 = vmatpush.bf16.msra.mxu1 %v3071_v38  ;;  %v4157_v38 = vld [vmem:[#allocation7 + $0x12c] sm:$0xf]  ;;  %v2863_v51 = vor.u32 %v4125_v36, %v2860_v37  ;;  %v3580_v26 = vld [vmem:[#allocation7 + $0x5d8] sm:$0xf0] }
  0xe3   :  { %2059 = vmatpush.bf16.msra.mxu2 %v3199_v39  ;;  %v3263_v39 = vor.u32 %v4225_v29, %v3260_v30  ;;  %v4373_v13 = vld [vmem:[#allocation7 + $0x7ec] sm:$0xf]  ;;  %v3708_v28 = vld [vmem:[#allocation7 + $0x6d8] sm:$0xf0] }
  0xe4   :  { %2073 = vmatpush.bf16.msra.mxu3 %v3327_v46  ;;  %v4701_v46 = vpop.f32.mrf.mxu0  ;;  %v4273_v22 = vld [vmem:[#allocation7 + $0x4cc] sm:$0xf]  ;;  %v3420_v57 = vld [vmem:[#allocation7 + $0x498] sm:$0xf0] }
  0xe5   :  { %2032 = vmatpush.bf16.msra.mxu0 %v2927_v53  ;;  %v2844_v53 = vld [vmem:[#allocation7 + $0x18] sm:$0xf0]  ;;  %v4305_v24 = vld [vmem:[#allocation7 + $0x5cc] sm:$0xf] }
  0xe6   :  { %2046 = vmatpush.bf16.msra.mxu1 %v3055_v54  ;;  %v2991_v54 = vor.u32 %v4157_v38, %v2988_v41  ;;  %v4337_v27 = vld [vmem:[#allocation7 + $0x6cc] sm:$0xf]  ;;  %v3583_v36 = vor.u32 %v4305_v24, %v3580_v26  ;;  %v3676_v62 = vld [vmem:[#allocation7 + $0x698] sm:$0xf0] }
  0xe7   :  { %2060 = vmatpush.bf16.msra.mxu2 %v3183_v55  ;;  %v3119_v55 = vor.u32 %v4189_v42, %v3116_v43  ;;  %v4369_v30 = vld [vmem:[#allocation7 + $0x7cc] sm:$0xf]  ;;  %v3711_v37 = vor.u32 %v4337_v27, %v3708_v28  ;;  %v3564_v43 = vld [vmem:[#allocation7 + $0x5b8] sm:$0xf0] }
  0xe8   :  { %2074 = vmatpush.bf16.msra.mxu3 %v3311_v60  ;;  %v3247_v60 = vor.u32 %v4221_v47, %v3244_v49  ;;  %v4705_v15 = vpop.f32.mrf.mxu2  ;;  %v4269_v38 = vld [vmem:[#allocation7 + $0x4ac] sm:$0xf]  ;;  %v3692_v49 = vld [vmem:[#allocation7 + $0x6b8] sm:$0xf0] }
  0xe9   :  { %2033 = vmatpush.bf16.msra.mxu0 %v2911_v3  ;;  %v4309_v3 = vld [vmem:[#allocation7 + $0x5ec] sm:$0xf]  ;;  %v3804_v0 = vld [vmem:[#allocation7 + $0x798] sm:$0xf0] }
  0xea   :  { %2047 = vmatpush.bf16.msra.mxu1 %v3039_v5  ;;  %v2847_v5 = vor.u32 %v4121_v52, %v2844_v53  ;;  %v4301_v41 = vld [vmem:[#allocation7 + $0x5ac] sm:$0xf]  ;;  %v3820_v52 = vld [vmem:[#allocation7 + $0x7b8] sm:$0xf0] }
  0xeb   :  { %2061 = vmatpush.bf16.msra.mxu2 %v3167_v6  ;;  %v3596_v6 = vld [vmem:[#allocation7 + $0x5f8] sm:$0xf0]  ;;  %v4333_v47 = vld [vmem:[#allocation7 + $0x6ac] sm:$0xf] }
  0xec   :  { %2075 = vmatpush.bf16.msra.mxu3 %v3295_v12  ;;  %v3103_v12 = vor.u32 %v4185_v58, %v3100_v61  ;;  %v4709_v29 = vpop.f32.mrf.mxu0  ;;  %v4265_v56 = vld [vmem:[#allocation7 + $0x48c] sm:$0xf]  ;;  %v3516_v28 = vld [vmem:[#allocation7 + $0x558] sm:$0xf0] }
  0xed   :  { %2034 = vmatpush.bf16.msra.mxu0 %v2895_v19  ;;  %v4707_v19 = vpop.f32.mrf.mxu3  ;;  %v4329_v61 = vld [vmem:[#allocation7 + $0x68c] sm:$0xf] }
  0xee   :  { %2048 = vmatpush.bf16.msra.mxu1 %v3023_v20  ;;  %v3599_v20 = vor.u32 %v4309_v3, %v3596_v6  ;;  %v4261_v6 = vld [vmem:[#allocation7 + $0x46c] sm:$0xf] }
  0xef   :  { %2062 = vmatpush.bf16.msra.mxu2 %v3151_v21  ;;  %v3727_v21 = vor.u32 %v4341_v7, %v3724_v8  ;;  %v3404_v7 = vld [vmem:[#allocation7 + $0x478] sm:$0xf0]  ;;  %v4293_v8 = vld [vmem:[#allocation7 + $0x56c] sm:$0xf] }
  0xf0   :  { %2076 = vmatpush.bf16.msra.mxu3 %v3279_v25  ;;  %v3855_v25 = vor.u32 %v4373_v13, %v3852_v14  ;;  %v4717_v58 = vpop.f32.mrf.mxu2  ;;  %v3532_v13 = vld [vmem:[#allocation7 + $0x578] sm:$0xf0]  ;;  %v4325_v14 = vld [vmem:[#allocation7 + $0x66c] sm:$0xf] }
  0xf1   :  { %2035 = vmatpush.bf16.msra.mxu0 %v2879_v32  ;;  %v3836_v32 = vld [vmem:[#allocation7 + $0x7d8] sm:$0xf0]  ;;  %v4257_v24 = vld [vmem:[#allocation7 + $0x44c] sm:$0xf] }
  0xf2   :  { %2049 = vmatpush.bf16.msra.mxu1 %v3007_v34  ;;  %v4711_v34 = vpop.f32.mrf.mxu1  ;;  %v3839_v42 = vor.u32 %v4369_v30, %v3836_v32  ;;  %v4289_v26 = vld [vmem:[#allocation7 + $0x54c] sm:$0xf]  ;;  %v3644_v32 = vld [vmem:[#allocation7 + $0x658] sm:$0xf0] }
  0xf3   :  { %2063 = vmatpush.bf16.msra.mxu2 %v3135_v35  ;;  %v3455_v35 = vor.u32 %v4273_v22, %v3452_v23  ;;  %v3535_v22 = vor.u32 %v4293_v8, %v3532_v13  ;;  %v4321_v30 = vld [vmem:[#allocation7 + $0x64c] sm:$0xf]  ;;  %v3612_v8 = vld [vmem:[#allocation7 + $0x618] sm:$0xf0] }
  0xf4   :  { %2077 = vmatpush.bf16.msra.mxu3 %v3263_v39  ;;  %v3436_v39 = vld [vmem:[#allocation7 + $0x4b8] sm:$0xf0]  ;;  %v4721_v1 = vpop.f32.mrf.mxu0 }
  0xf5   :  { %2036 = vmatpush.bf16.msra.mxu0 %v2863_v51  ;;  %v4365_v51 = vld [vmem:[#allocation7 + $0x7ac] sm:$0xf]  ;;  %v3439_v53 = vor.u32 %v4269_v38, %v3436_v39  ;;  %v4719_v63 = vpop.f32.mrf.mxu3  ;;  %v3740_v13 = vld [vmem:[#allocation7 + $0x718] sm:$0xf0] }
  0xf6   :  { %2050 = vmatpush.bf16.msra.mxu1 %v2991_v54  ;;  %v3567_v54 = vor.u32 %v4301_v41, %v3564_v43  ;;  %v3519_v41 = vor.u32 %v4289_v26, %v3516_v28 }
  0xf7   :  { %2064 = vmatpush.bf16.msra.mxu2 %v3119_v55  ;;  %v3695_v55 = vor.u32 %v4333_v47, %v3692_v49  ;;  %v4253_v47 = vld [vmem:[#allocation7 + $0x42c] sm:$0xf]  ;;  %v3372_v49 = vld [vmem:[#allocation7 + $0x438] sm:$0xf0] }
  0xf8   :  { %2078 = vmatpush.bf16.msra.mxu3 %v3247_v60  ;;  %v3823_v60 = vor.u32 %v4365_v51, %v3820_v52  ;;  %v4285_v51 = vld [vmem:[#allocation7 + $0x52c] sm:$0xf] }
  0xf9   :  { %2037 = vmatpush.bf16.msra.mxu0 %v2847_v5  ;;  %v3679_v5 = vor.u32 %v4329_v61, %v3676_v62  ;;  %v1718_v61 = vadd.f32 %v4695_v10, %v4693_v4  ;;  %v3978_v10 = vld [vmem:[#allocation10 + $0xf0] sm:$0xf] }
  0xfa   :  { %2051 = vmatpush.bf16.msra.mxu1 %v2975_v9  ;;  %v4723_v9 = vpop.f32.mrf.mxu1 }
  0xfb   :  { %2065 = vmatpush.bf16.msra.mxu2 %v3103_v12 }
  0xfc   :  { %2079 = vmatpush.bf16.msra.mxu3 %v3231_v16  ;;  %2038 = vmatmul.bf16.vlgmr.msra.gmra.mxu0 %v4653_v59  ;;  %v4361_v59 = vld [vmem:[#allocation7 + $0x78c] sm:$0xf]  ;;  %v3660_v16 = vld [vmem:[#allocation7 + $0x678] sm:$0xf0]  ;;  %v1815_v43 = vpop.f32.mrf.mxu0 }
  0xfd   :  { %2086 = vmatpush.bf16.msrb.mxu0 %v3471_v17  ;;  %2052 = vmatmul.bf16.vlgmr.msra.gmra.mxu1 %v4659_v11  ;;  %v3423_v11 = vor.u32 %v4265_v56, %v3420_v57  ;;  %v3807_v12 = vor.u32 %v4361_v59, %v3804_v0  ;;  %v4357_v17 = vld [vmem:[#allocation7 + $0x76c] sm:$0xf]  ;;  %v3663_v23 = vor.u32 %v4325_v14, %v3660_v16  ;;  %v4727_v39 = vpop.f32.mrf.mxu3  ;;  %v3356_v0 = vld [vmem:[#allocation7 + $0x418] sm:$0xf0]  ;;  %v3914_v14 = vld [vmem:[#allocation10 + $0x70] sm:$0xf] }
  0xfe   :  { %2100 = vmatpush.bf16.msrb.mxu1 %v3599_v20  ;;  %2066 = vmatmul.bf16.vlgmr.msra.gmra.mxu2 %v4655_v2  ;;  %v4297_v2 = vld [vmem:[#allocation7 + $0x58c] sm:$0xf]  ;;  %v3788_v20 = vld [vmem:[#allocation7 + $0x778] sm:$0xf0] }
  0xff   :  { %2114 = vmatpush.bf16.msrb.mxu2 %v3727_v21  ;;  %2080 = vmatmul.bf16.vlgmr.msra.gmra.mxu3 %v4661_v18  ;;  %v3548_v18 = vld [vmem:[#allocation7 + $0x598] sm:$0xf0]  ;;  %v3407_v21 = vor.u32 %v4261_v6, %v3404_v7  ;;  %v3791_v27 = vor.u32 %v4357_v17, %v3788_v20  ;;  %v4349_v57 = vld [vmem:[#allocation7 + $0x72c] sm:$0xf] }
 0x100   :  { %2128 = vmatpush.bf16.msrb.mxu3 %v3855_v25  ;;  %v3551_v3 = vor.u32 %v4297_v2, %v3548_v18  ;;  %v3388_v25 = vld [vmem:[#allocation7 + $0x458] sm:$0xf0]  ;;  %v4249_v18 = vld [vmem:[#allocation7 + $0x40c] sm:$0xf] }
 0x101   :  { %2087 = vmatpush.bf16.msrb.mxu0 %v3455_v35  ;;  %v4353_v35 = vld [vmem:[#allocation7 + $0x74c] sm:$0xf]  ;;  %v3391_v38 = vor.u32 %v4257_v24, %v3388_v25  ;;  %v3756_v2 = vld [vmem:[#allocation7 + $0x738] sm:$0xf0]  ;;  %v3359_v4 = vor.u32 %v4249_v18, %v3356_v0 }
 0x102   :  { %2101 = vmatpush.bf16.msrb.mxu1 %v3583_v36  ;;  %v3772_v36 = vld [vmem:[#allocation7 + $0x758] sm:$0xf0]  ;;  %v1829_v56 = vpop.f32.mrf.mxu1  ;;  %v3759_v6 = vor.u32 %v4349_v57, %v3756_v2  ;;  %v4313_v7 = vld [vmem:[#allocation7 + $0x60c] sm:$0xf]  ;;  %v3890_v57 = vld [vmem:[#allocation10 + $0x40] sm:$0xf] }
 0x103   :  { %2115 = vmatpush.bf16.msrb.mxu2 %v3711_v37  ;;  %v4725_v37 = vpop.f32.mrf.mxu2  ;;  %v3775_v52 = vor.u32 %v4353_v35, %v3772_v36  ;;  %v4391_v16 = vld [vmem:[#allocation10 + $0x74] sm:$0xf0]  ;;  %v1830_v24 = vadd.f32 %v1829_v56, %v1815_v43  ;;  %v3970_v35 = vld [vmem:[#allocation10 + $0xe0] sm:$0xf]  ;;  %v4405_v36 = vld [vmem:[#allocation10 + $0xe4] sm:$0xf0] }
 0x104   :  { %2129 = vmatpush.bf16.msrb.mxu3 %v3839_v42  ;;  %v3647_v42 = vor.u32 %v4321_v30, %v3644_v32  ;;  %v4407_v17 = vld [vmem:[#allocation10 + $0xf4] sm:$0xf0]  ;;  %v3915_v26 = vor.u32 %v4391_v16, %v3914_v14  ;;  %v1817_v28 = vpop.f32.mrf.mxu0  ;;  %v3906_v30 = vld [vmem:[#allocation10 + $0x60] sm:$0xf]  ;;  %v4389_v32 = vld [vmem:[#allocation10 + $0x64] sm:$0xf0]  ;;  %v3971_v43 = vor.u32 %v4405_v36, %v3970_v35 }
 0x105   :  { %2088 = vmatpush.bf16.msrb.mxu0 %v3439_v53  ;;  %v3500_v53 = vld [vmem:[#allocation7 + $0x538] sm:$0xf0]  ;;  %v4385_v2 = vld [vmem:[#allocation10 + $0x44] sm:$0xf0]  ;;  %v3874_v14 = vld [vmem:[#allocation10 + $0x20] sm:$0xf] }
 0x106   :  { %2102 = vmatpush.bf16.msrb.mxu1 %v3567_v54  ;;  %v4317_v54 = vld [vmem:[#allocation7 + $0x62c] sm:$0xf]  ;;  %v3503_v62 = vor.u32 %v4285_v51, %v3500_v53  ;;  %v3930_v35 = vld [vmem:[#allocation10 + $0x90] sm:$0xf]  ;;  %v4395_v36 = vld [vmem:[#allocation10 + $0x94] sm:$0xf0] }
 0x107   :  { %2116 = vmatpush.bf16.msrb.mxu2 %v3695_v55  ;;  %v3628_v55 = vld [vmem:[#allocation7 + $0x638] sm:$0xf0]  ;;  %v4381_v16 = vld [vmem:[#allocation10 + $0x24] sm:$0xf0] }
 0x108   :  { %2130 = vmatpush.bf16.msrb.mxu3 %v3823_v60  ;;  %v3375_v60 = vor.u32 %v4253_v47, %v3372_v49  ;;  %v3631_v59 = vor.u32 %v4317_v54, %v3628_v55  ;;  %v3898_v47 = vld [vmem:[#allocation10 + $0x50] sm:$0xf]  ;;  %v4387_v49 = vld [vmem:[#allocation10 + $0x54] sm:$0xf0] }
 0x109   :  { %2089 = vmatpush.bf16.msrb.mxu0 %v3423_v11  ;;  %v4281_v11 = vld [vmem:[#allocation7 + $0x50c] sm:$0xf]  ;;  %v3899_v54 = vor.u32 %v4387_v49, %v3898_v47 }
 0x10a   :  { %2103 = vmatpush.bf16.msrb.mxu1 %v3551_v3  ;;  %v3484_v3 = vld [vmem:[#allocation7 + $0x518] sm:$0xf0]  ;;  %v4377_v47 = vld [vmem:[#allocation10 + $0x4] sm:$0xf0] }
 0x10b   :  { %2117 = vmatpush.bf16.msrb.mxu2 %v3679_v5  ;;  %v1720_v5 = vadd.f32 %v4703_v50, %v4701_v46  ;;  %v1843_v20 = vpop.f32.mrf.mxu2  ;;  %v1857_v46 = vpop.f32.mrf.mxu3 }
 0x10c   :  { %2131 = vmatpush.bf16.msrb.mxu3 %v3807_v12  ;;  %v4345_v12 = vld [vmem:[#allocation7 + $0x70c] sm:$0xf] }
 0x10d   :  { %2090 = vmatpush.bf16.msrb.mxu0 %v3407_v21  ;;  %v1732_v21 = vadd.f32 %v4697_v31, %v1718_v61  ;;  %v1734_v50 = vadd.f32 %v4705_v15, %v1720_v5  ;;  %v3743_v25 = vor.u32 %v4345_v12, %v3740_v13  ;;  %v1844_v15 = vadd.f32 %v1843_v20, %v1830_v24  ;;  %v3946_v5 = vld [vmem:[#allocation10 + $0xb0] sm:$0xf]  ;;  %v4397_v20 = vld [vmem:[#allocation10 + $0xa4] sm:$0xf0] }
 0x10e   :  { %2104 = vmatpush.bf16.msrb.mxu1 %v3535_v22  ;;  %v3487_v22 = vor.u32 %v4281_v11, %v3484_v3  ;;  %v3882_v11 = vld [vmem:[#allocation10 + $0x30] sm:$0xf]  ;;  %v4383_v3 = vld [vmem:[#allocation10 + $0x34] sm:$0xf0] }
 0x10f   :  { %2118 = vmatpush.bf16.msrb.mxu2 %v3663_v23  ;;  %v3615_v23 = vor.u32 %v4313_v7, %v3612_v8  ;;  %v1746_v31 = vadd.f32 %v4699_v33, %v1732_v21  ;;  %v3962_v33 = vld [vmem:[#allocation10 + $0xd0] sm:$0xf]  ;;  %v1858_v53 = vadd.f32 %v1857_v46, %v1844_v15  ;;  %v4746_v7 = vld [vmem:[#allocation9] sm:$0xf] }
 0x110   :  { %2132 = vmatpush.bf16.msrb.mxu3 %v3791_v27  ;;  %v3979_v27 = vor.u32 %v4407_v17, %v3978_v10  ;;  %v3938_v17 = vld [vmem:[#allocation10 + $0xa0] sm:$0xf]  ;;  %v3866_v24 = vld [vmem:[#allocation10 + $0x10] sm:$0xf] }
 0x111   :  { %2091 = vmatpush.bf16.msrb.mxu0 %v3391_v38  ;;  %v1831_v38 = vpop.f32.mrf.mxu1 }
 0x112   :  { %2105 = vmatpush.bf16.msrb.mxu1 %v3519_v41  ;;  %v1748_v41 = vadd.f32 %v4707_v19, %v1734_v50  ;;  %v1760_v19 = vadd.f32 %v4709_v29, %v1746_v31 }
 0x113   :  { %2119 = vmatpush.bf16.msrb.mxu2 %v3647_v42  ;;  %v3907_v42 = vor.u32 %v4389_v32, %v3906_v30  ;;  %v1845_v55 = vpop.f32.mrf.mxu2  ;;  %v1859_v56 = vpop.f32.mrf.mxu3  ;;  %v4423_v30 = vld [vmem:[#allocation10 + $0x174] sm:$0xf0] }
 0x114   :  { %2133 = vmatpush.bf16.msrb.mxu3 %v3775_v52  ;;  %v1762_v51 = vadd.f32 %v4721_v1, %v1748_v41  ;;  %v4403_v52 = vld [vmem:[#allocation10 + $0xd4] sm:$0xf0]  ;;  %v1774_v61 = vadd.f32 %v4711_v34, %v1760_v19  ;;  %v2172_v41 = vperm.slane %v4746_v7, 1  ;;  %v4034_v19 = vld [vmem:[#allocation10 + $0x160] sm:$0xf] }
 0x115   :  { %2092 = vmatpush.bf16.msrb.mxu0 %v3375_v60  ;;  %v4401_v60 = vld [vmem:[#allocation10 + $0xc4] sm:$0xf0] }
 0x116   :  { %2106 = vmatpush.bf16.msrb.mxu1 %v3503_v62  ;;  %v1776_v1 = vadd.f32 %v4723_v9, %v1762_v51  ;;  %v3891_v62 = vor.u32 %v4385_v2, %v3890_v57  ;;  %v1788_v12 = vadd.f32 %v4717_v58, %v1774_v61  ;;  %v3931_v51 = vor.u32 %v4395_v36, %v3930_v35  ;;  %v4400_v35 = vld [vmem:[#allocation10 + $0xc4] sm:$0xf]  ;;  %v3956_v36 = vld [vmem:[#allocation10 + $0xc8] sm:$0xf0] }
 0x117   :  { %2120 = vmatpush.bf16.msrb.mxu2 %v3631_v59 }
 0x118   :  { %2134 = vmatpush.bf16.msrb.mxu3 %v3759_v6  ;;  %v4399_v6 = vld [vmem:[#allocation10 + $0xb4] sm:$0xf0]  ;;  %v1802_v50 = vadd.f32 %v4719_v63, %v1788_v12  ;;  %v4404_v12 = vld [vmem:[#allocation10 + $0xe4] sm:$0xf] }
 0x119   :  { %2093 = vmatpush.bf16.msrb.mxu0 %v3359_v4  ;;  %v1871_v18 = vpop.f32.mrf.mxu0  ;;  %v3947_v13 = vor.u32 %v4399_v6, %v3946_v5  ;;  %v2171_v4 = vperm.slane %v4746_v7, 0  ;;  %v3908_v5 = vld [vmem:[#allocation10 + $0x68] sm:$0xf0] }
 0x11a   :  { %2107 = vmatpush.bf16.msrb.mxu1 %v3487_v22  ;;  %v1872_v29 = vadd.f32 %v1871_v18, %v1858_v53  ;;  %v1885_v59 = vpop.f32.mrf.mxu1 }
 0x11b   :  { %2121 = vmatpush.bf16.msrb.mxu2 %v3615_v23  ;;  %v2179_v15 = vadd.f32 %v2171_v4, %v1802_v50  ;;  %v3964_v50 = vld [vmem:[#allocation10 + $0xd8] sm:$0xf0] }
 0x11c   :  { %2135 = vmatpush.bf16.msrb.mxu3 %v3743_v25  ;;  %2094 = vmatmul.bf16.vlgmr.msrb.gmra.mxu0 %v4665_v40  ;;  %v3963_v40 = vor.u32 %v4403_v52, %v3962_v33  ;;  %v1886_v8 = vadd.f32 %v1885_v59, %v1872_v29  ;;  %v3922_v33 = vld [vmem:[#allocation10 + $0x80] sm:$0xf]  ;;  %v4393_v52 = vld [vmem:[#allocation10 + $0x84] sm:$0xf0]  ;;  %v4419_v59 = vld [vmem:[#allocation10 + $0x154] sm:$0xf0] }
 0x11d   :  { %2621 = vmatpush.bf16.msra.mxu0 %v3915_v26  ;;  %2108 = vmatmul.bf16.vlgmr.msrb.gmra.mxu1 %v4669_v45  ;;  %v3954_v45 = vld [vmem:[#allocation10 + $0xc0] sm:$0xf]  ;;  %v3939_v26 = vor.u32 %v4397_v20, %v3938_v17  ;;  %vm2187_vm1 = vcmp.gt.f32.partialorder %v2179_v15, 0.0  ;;  %v3900_v20 = vld [vmem:[#allocation10 + $0x58] sm:$0xf0] }
 0x11e   :  { %2635 = vmatpush.bf16.msra.mxu1 %v3979_v27  ;;  %2122 = vmatmul.bf16.vlgmr.msrb.gmra.mxu2 %v4667_v44  ;;  %v1832_v44 = vadd.f32 %v1831_v38, %v1817_v28  ;;  %v3955_v0 = vor.u32 %v4401_v60, %v3954_v45  ;;  %v4379_v27 = vld [vmem:[#allocation10 + $0x14] sm:$0xf0]  ;;  %v4042_v28 = vld [vmem:[#allocation10 + $0x170] sm:$0xf]  ;;  %v3980_v45 = vld [vmem:[#allocation10 + $0xf8] sm:$0xf0] }
 0x11f   :  { %2136 = vmatmul.bf16.vlgmr.msrb.gmra.mxu3 %v4671_v48  ;;  %v1790_v48 = vadd.f32 %v4725_v37, %v1776_v1  ;;  %v3883_v37 = vor.u32 %v4383_v3, %v3882_v11  ;;  %v4043_v38 = vor.u32 %v4423_v30, %v4042_v28  ;;  %v3867_v63 = vor.u32 %v4379_v27, %v3866_v24  ;;  %v4406_v1 = vld [vmem:[#allocation10 + $0xf4] sm:$0xf]  ;;  %v4388_v3 = vld [vmem:[#allocation10 + $0x64] sm:$0xf]  ;;  %v4415_v24 = vld [vmem:[#allocation10 + $0x134] sm:$0xf0] }
 0x120   :  { %v1846_v9 = vadd.f32 %v1845_v55, %v1832_v44  ;;  %v3916_v55 = vld [vmem:[#allocation10 + $0x78] sm:$0xf0]  ;;  %v2195_v44 = vmul.f32 0.2, %v2179_v15  ;;  %v3983_v11 = vor.u32 %v4406_v1, %v3980_v45  ;;  %v4384_v28 = vld [vmem:[#allocation10 + $0x44] sm:$0xf] }
 0x121   :  { %2622 = vmatpush.bf16.msra.mxu0 %v3907_v42  ;;  %v1804_v34 = vadd.f32 %v4727_v39, %v1790_v48  ;;  %v1899_v10 = vpop.f32.mrf.mxu2  ;;  %v1873_v23 = vpop.f32.mrf.mxu0  ;;  %v3875_v39 = vor.u32 %v4381_v16, %v3874_v14  ;;  %2649 = vmatpush.bf16.msra.mxu2 %v4043_v38  ;;  %v3923_v48 = vor.u32 %v4393_v52, %v3922_v33  ;;  %v3892_v30 = vld [vmem:[#allocation10 + $0x48] sm:$0xf0]  ;;  %v3994_v33 = vld [vmem:[#allocation10 + $0x110] sm:$0xf]  ;;  %v4411_v52 = vld [vmem:[#allocation10 + $0x114] sm:$0xf0] }
 0x122   :  { %2636 = vmatpush.bf16.msra.mxu1 %v3971_v43  ;;  %v1860_v21 = vadd.f32 %v1859_v56, %v1846_v9  ;;  %v1900_v22 = vadd.f32 %v1899_v10, %v1886_v8  ;;  %v1913_v46 = vpop.f32.mrf.mxu3  ;;  %v1887_v32 = vpop.f32.mrf.mxu1  ;;  %v3858_v43 = vld [vmem:[#allocation10] sm:$0xf]  ;;  %v3895_v38 = vor.u32 %v4384_v28, %v3892_v30  ;;  %v4409_v45 = vld [vmem:[#allocation10 + $0x104] sm:$0xf0]  ;;  %v4012_v28 = vld [vmem:[#allocation10 + $0x138] sm:$0xf0] }
 0x123   :  { %v2183_v58 = vadd.f32 %v2171_v4, %v1804_v34  ;;  %v3859_v18 = vor.u32 %v4377_v47, %v3858_v43  ;;  %v3972_v34 = vld [vmem:[#allocation10 + $0xe8] sm:$0xf0]  ;;  %v3911_v4 = vor.u32 %v4388_v3, %v3908_v5  ;;  %v4018_v10 = vld [vmem:[#allocation10 + $0x140] sm:$0xf]  ;;  %v4398_v47 = vld [vmem:[#allocation10 + $0xb4] sm:$0xf] }
 0x124   :  { %v1874_v25 = vadd.f32 %v1873_v23, %v1860_v21  ;;  %v1914_v31 = vadd.f32 %v1913_v46, %v1900_v22  ;;  %v3975_v17 = vor.u32 %v4404_v12, %v3972_v34  ;;  %v4402_v21 = vld [vmem:[#allocation10 + $0xd4] sm:$0xf]  ;;  %v4417_v22 = vld [vmem:[#allocation10 + $0x144] sm:$0xf0]  ;;  %v3986_v1 = vld [vmem:[#allocation10 + $0x100] sm:$0xf] }
 0x125   :  { %2623 = vmatpush.bf16.msra.mxu0 %v3899_v54  ;;  %v2199_v42 = vmul.f32 0.2, %v2183_v58  ;;  %v4390_v54 = vld [vmem:[#allocation10 + $0x74] sm:$0xf]  ;;  %vm2191_vm0 = vcmp.gt.f32.partialorder %v2183_v58, 0.0  ;;  %v3967_v27 = vor.u32 %v4402_v21, %v3964_v50 }
 0x126   :  { %2637 = vmatpush.bf16.msra.mxu1 %v3963_v40  ;;  %v1888_v49 = vadd.f32 %v1887_v32, %v1874_v25  ;;  %v4421_v40 = vld [vmem:[#allocation10 + $0x164] sm:$0xf0]  ;;  %v2180_v56 = vadd.f32 %v2172_v41, %v1914_v31  ;;  %v3919_v29 = vor.u32 %v4390_v54, %v3916_v55  ;;  %v4002_v31 = vld [vmem:[#allocation10 + $0x120] sm:$0xf]  ;;  %v3876_v54 = vld [vmem:[#allocation10 + $0x28] sm:$0xf0]  ;;  %v3995_v55 = vor.u32 %v4411_v52, %v3994_v33 }
 0x127   :  { %v4035_v60 = vor.u32 %v4421_v40, %v4034_v19  ;;  %v4396_v40 = vld [vmem:[#allocation10 + $0xa4] sm:$0xf]  ;;  %v4036_v12 = vld [vmem:[#allocation10 + $0x168] sm:$0xf0] }
 0x128   :  { %v2196_v9 = vmul.f32 0.2, %v2180_v56  ;;  %vm2188_vm2 = vcmp.gt.f32.partialorder %v2180_v56, 0.0  ;;  %v4376_v5 = vld [vmem:[#allocation10 + $0x4] sm:$0xf] }
 0x129   :  { %2624 = vmatpush.bf16.msra.mxu0 %v3891_v62  ;;  %v1901_v53 = vpop.f32.mrf.mxu2  ;;  %2650 = vmatpush.bf16.msra.mxu2 %v4035_v60  ;;  %v4026_v62 = vld [vmem:[#allocation10 + $0x150] sm:$0xf]  ;;  %v4392_v34 = vld [vmem:[#allocation10 + $0x84] sm:$0xf]  ;;  %v3988_v52 = vld [vmem:[#allocation10 + $0x108] sm:$0xf0] }
 0x12a   :  { %2638 = vmatpush.bf16.msra.mxu1 %v3955_v0  ;;  %v1902_v57 = vadd.f32 %v1901_v53, %v1888_v49  ;;  %v1915_v2 = vpop.f32.mrf.mxu3  ;;  %v2207_v0 = vsel %vm2191_vm0, %v2183_v58, %v2199_v42  ;;  %v4027_v6 = vor.u32 %v4419_v59, %v4026_v62  ;;  %v2204_v23 = vsel %vm2188_vm2, %v2180_v56, %v2196_v9  ;;  %v4382_v42 = vld [vmem:[#allocation10 + $0x34] sm:$0xf]  ;;  %v3948_v49 = vld [vmem:[#allocation10 + $0xb8] sm:$0xf0]  ;;  %v4380_v53 = vld [vmem:[#allocation10 + $0x24] sm:$0xf] }
 0x12b   :  { %v4019_v58 = vor.u32 %v4417_v22, %v4018_v10  ;;  %v3951_v19 = vor.u32 %v4398_v47, %v3948_v49  ;;  %v3940_v56 = vld [vmem:[#allocation10 + $0xa8] sm:$0xf0]  ;;  %v4394_v62 = vld [vmem:[#allocation10 + $0x94] sm:$0xf]  ;;  %v3932_v59 = vld [vmem:[#allocation10 + $0x98] sm:$0xf0] }
 0x12c   :  { %v1916_v61 = vadd.f32 %v1915_v2, %v1902_v57  ;;  %v3879_v57 = vor.u32 %v4380_v53, %v3876_v54  ;;  %v4378_v2 = vld [vmem:[#allocation10 + $0x14] sm:$0xf]  ;;  %v3943_v60 = vor.u32 %v4396_v40, %v3940_v56  ;;  %v3860_v9 = vld [vmem:[#allocation10 + $0x8] sm:$0xf0]  ;;  %v3996_v49 = vld [vmem:[#allocation10 + $0x118] sm:$0xf0] }
 0x12d   :  { %2625 = vmatpush.bf16.msra.mxu0 %v3883_v37  ;;  %v2203_v37 = vsel %vm2187_vm1, %v2179_v15, %v2195_v44  ;;  %2651 = vmatpush.bf16.msra.mxu2 %v4027_v6  ;;  %v3959_v15 = vor.u32 %v4400_v35, %v3956_v36  ;;  %v3868_v44 = vld [vmem:[#allocation10 + $0x18] sm:$0xf0]  ;;  %v3935_v6 = vor.u32 %v4394_v62, %v3932_v59  ;;  %v4412_v36 = vld [vmem:[#allocation10 + $0x124] sm:$0xf]  ;;  %v4410_v47 = vld [vmem:[#allocation10 + $0x114] sm:$0xf] }
 0x12e   :  { %2639 = vmatpush.bf16.msra.mxu1 %v3947_v13  ;;  %v2184_v8 = vadd.f32 %v2172_v41, %v1916_v61  ;;  %v4386_v13 = vld [vmem:[#allocation10 + $0x54] sm:$0xf]  ;;  %v4755_v16 = vpack.c.bf16 %v2207_v0, %v2203_v37  ;;  %v4413_v41 = vld [vmem:[#allocation10 + $0x124] sm:$0xf0]  ;;  %v3871_v3 = vor.u32 %v4378_v2, %v3868_v44  ;;  %v3924_v37 = vld [vmem:[#allocation10 + $0x88] sm:$0xf0] }
 0x12f   :  { %v4003_v43 = vor.u32 %v4413_v41, %v4002_v31  ;;  %v4422_v61 = vld [vmem:[#allocation10 + $0x174] sm:$0xf]  ;;  %v4408_v33 = vld [vmem:[#allocation10 + $0x104] sm:$0xf]  ;;  %v4106_v53 = vld [vmem:[#allocation10 + $0x1f0] sm:$0xf] }
 0x130   :  { %vm2192_vm3 = vcmp.gt.f32.partialorder %v2184_v8, 0.0  ;;  %v2200_v14 = vmul.f32 0.2, %v2184_v8  ;;  %v4439_v54 = vld [vmem:[#allocation10 + $0x1f4] sm:$0xf0]  ;;  %v3991_v2 = vor.u32 %v4408_v33, %v3988_v52 }
 0x131   :  { %2626 = vmatpush.bf16.msra.mxu0 %v3875_v39  ;;  %v4010_v39 = vld [vmem:[#allocation10 + $0x130] sm:$0xf]  ;;  %2652 = vmatpush.bf16.msra.mxu2 %v4019_v58  ;;  %v4416_v58 = vld [vmem:[#allocation10 + $0x144] sm:$0xf]  ;;  %v4098_v44 = vld [vmem:[#allocation10 + $0x1e0] sm:$0xf] }
 0x132   :  { %2640 = vmatpush.bf16.msra.mxu1 %v3939_v26  ;;  %v2208_v46 = vsel %vm2192_vm3, %v2184_v8, %v2200_v14  ;;  %v3903_v26 = vor.u32 %v4386_v13, %v3900_v20  ;;  %v4011_v32 = vor.u32 %v4415_v24, %v4010_v39  ;;  %v4420_v8 = vld [vmem:[#allocation10 + $0x164] sm:$0xf]  ;;  %v3863_v14 = vor.u32 %v4376_v5, %v3860_v9  ;;  %v4028_v20 = vld [vmem:[#allocation10 + $0x158] sm:$0xf0]  ;;  %v4020_v39 = vld [vmem:[#allocation10 + $0x148] sm:$0xf0] }
 0x133   :  { %v4759_v25 = vpack.c.bf16 %v2208_v46, %v2204_v23  ;;  %v4039_v13 = vor.u32 %v4420_v8, %v4036_v12  ;;  %v4023_v24 = vor.u32 %v4416_v58, %v4020_v39  ;;  %v4433_v12 = vld [vmem:[#allocation10 + $0x1c4] sm:$0xf0]  ;;  %v4058_v39 = vld [vmem:[#allocation10 + $0x190] sm:$0xf] }
 0x135   :  { %2627 = vmatpush.bf16.msra.mxu0 %v3867_v63  ;;  %v3884_v63 = vld [vmem:[#allocation10 + $0x38] sm:$0xf0]  ;;  %2653 = vmatpush.bf16.msra.mxu2 %v4011_v32 }
 0x136   :  { %2641 = vmatpush.bf16.msra.mxu1 %v3931_v51  ;;  %v3887_v51 = vor.u32 %v4382_v42, %v3884_v63 }
 0x139   :  { %2628 = vmatpush.bf16.msra.mxu0 %v3859_v18  ;;  %2654 = vmatpush.bf16.msra.mxu2 %v4003_v43  ;;  %v3987_v18 = vor.u32 %v4409_v45, %v3986_v1  ;;  %v4107_v1 = vor.u32 %v4439_v54, %v4106_v53  ;;  %v4430_v53 = vld [vmem:[#allocation10 + $0x1b4] sm:$0xf]  ;;  %v4076_v54 = vld [vmem:[#allocation10 + $0x1b8] sm:$0xf0] }
 0x13a   :  { %2642 = vmatpush.bf16.msra.mxu1 %v3923_v48  ;;  %v4044_v48 = vld [vmem:[#allocation10 + $0x178] sm:$0xf0] }
 0x13b   :  { %v4047_v0 = vor.u32 %v4422_v61, %v4044_v48  ;;  %2663 = vmatpush.bf16.msra.mxu3 %v4107_v1  ;;  %v2173_v48 = vperm.slane %v4746_v7, 2 }
 0x13c   :  { %2629 = vmatmul.bf16.vlgmr.msra.gmra.mxu0 %v4755_v16 }
 0x13d   :  { %2677 = vmatpush.bf16.msrb.mxu0 %v3919_v29  ;;  %2643 = vmatmul.bf16.vlgmr.msra.gmra.mxu1 %v4759_v25  ;;  %v1927_v29 = vpop.f32.mrf.mxu0 }
 0x13e   :  { %2691 = vmatpush.bf16.msrb.mxu1 %v3983_v11  ;;  %2655 = vmatpush.bf16.msra.mxu2 %v3995_v55  ;;  %v1941_v11 = vpop.f32.mrf.mxu1 }
 0x13f   :  { %v1942_v23 = vadd.f32 %v1941_v11, %v1927_v29  ;;  %v4435_v11 = vld [vmem:[#allocation10 + $0x1d4] sm:$0xf0] }
 0x141   :  { %2678 = vmatpush.bf16.msrb.mxu0 %v3911_v4  ;;  %v3927_v4 = vor.u32 %v4392_v34, %v3924_v37  ;;  %v1955_v10 = vpop.f32.mrf.mxu2 }
 0x142   :  { %2692 = vmatpush.bf16.msrb.mxu1 %v3975_v17  ;;  %2656 = vmatpush.bf16.msra.mxu2 %v3987_v18  ;;  %v4418_v17 = vld [vmem:[#allocation10 + $0x154] sm:$0xf]  ;;  %v1969_v21 = vpop.f32.mrf.mxu3  ;;  %v4437_v18 = vld [vmem:[#allocation10 + $0x1e4] sm:$0xf0] }
 0x143   :  { %v4031_v22 = vor.u32 %v4418_v17, %v4028_v20  ;;  %v4099_v29 = vor.u32 %v4437_v18, %v4098_v44 }
 0x145   :  { %2679 = vmatpush.bf16.msrb.mxu0 %v3903_v26  ;;  %v1929_v46 = vpop.f32.mrf.mxu0  ;;  %v1956_v26 = vadd.f32 %v1955_v10, %v1942_v23  ;;  %2664 = vmatpush.bf16.msra.mxu3 %v4099_v29  ;;  %v4426_v29 = vld [vmem:[#allocation10 + $0x194] sm:$0xf] }
 0x146   :  { %2693 = vmatpush.bf16.msrb.mxu1 %v3967_v27  ;;  %2705 = vmatpush.bf16.msrb.mxu2 %v4047_v0  ;;  %v1943_v50 = vpop.f32.mrf.mxu1  ;;  %v4414_v27 = vld [vmem:[#allocation10 + $0x134] sm:$0xf]  ;;  %v4090_v0 = vld [vmem:[#allocation10 + $0x1d0] sm:$0xf] }
 0x147   :  { %v4015_v30 = vor.u32 %v4414_v27, %v4012_v28  ;;  %v1970_v32 = vadd.f32 %v1969_v21, %v1956_v26  ;;  %v1944_v41 = vadd.f32 %v1943_v50, %v1929_v46  ;;  %v4091_v8 = vor.u32 %v4435_v11, %v4090_v0  ;;  %v4066_v46 = vld [vmem:[#allocation10 + $0x1a0] sm:$0xf]  ;;  %v4429_v50 = vld [vmem:[#allocation10 + $0x1a4] sm:$0xf0] }
 0x148   :  { %v4067_v58 = vor.u32 %v4429_v50, %v4066_v46  ;;  %v4050_v27 = vld [vmem:[#allocation10 + $0x180] sm:$0xf]  ;;  %v4425_v28 = vld [vmem:[#allocation10 + $0x184] sm:$0xf0] }
 0x149   :  { %2680 = vmatpush.bf16.msrb.mxu0 %v3895_v38  ;;  %v1957_v35 = vpop.f32.mrf.mxu2  ;;  %v4004_v38 = vld [vmem:[#allocation10 + $0x128] sm:$0xf0]  ;;  %2665 = vmatpush.bf16.msra.mxu3 %v4091_v8 }
 0x14a   :  { %2694 = vmatpush.bf16.msrb.mxu1 %v3959_v15  ;;  %2706 = vmatpush.bf16.msrb.mxu2 %v4039_v13  ;;  %v1971_v31 = vpop.f32.mrf.mxu3  ;;  %v4007_v42 = vor.u32 %v4412_v36, %v4004_v38  ;;  %v4074_v13 = vld [vmem:[#allocation10 + $0x1b0] sm:$0xf] }
 0x14d   :  { %2681 = vmatpush.bf16.msrb.mxu0 %v3887_v51 }
 0x14e   :  { %2695 = vmatpush.bf16.msrb.mxu1 %v3951_v19  ;;  %2707 = vmatpush.bf16.msrb.mxu2 %v4031_v22 }
 0x151   :  { %2682 = vmatpush.bf16.msrb.mxu0 %v3879_v57 }
 0x152   :  { %2696 = vmatpush.bf16.msrb.mxu1 %v3943_v60  ;;  %2708 = vmatpush.bf16.msrb.mxu2 %v4023_v24  ;;  %v4427_v24 = vld [vmem:[#allocation10 + $0x194] sm:$0xf0] }
 0x153   :  { %v4059_v26 = vor.u32 %v4427_v24, %v4058_v39 }
 0x155   :  { %2683 = vmatpush.bf16.msrb.mxu0 %v3871_v3  ;;  %v4082_v3 = vld [vmem:[#allocation10 + $0x1c0] sm:$0xf] }
 0x156   :  { %2697 = vmatpush.bf16.msrb.mxu1 %v3935_v6  ;;  %2709 = vmatpush.bf16.msrb.mxu2 %v4015_v30  ;;  %v4083_v37 = vor.u32 %v4433_v12, %v4082_v3  ;;  %v4051_v30 = vor.u32 %v4425_v28, %v4050_v27 }
 0x158   :  { %2666 = vmatpush.bf16.msra.mxu3 %v4083_v37 }
 0x159   :  { %2684 = vmatpush.bf16.msrb.mxu0 %v3863_v14  ;;  %v1983_v15 = vpop.f32.mrf.mxu0  ;;  %v4431_v14 = vld [vmem:[#allocation10 + $0x1b4] sm:$0xf0] }
 0x15a   :  { %2698 = vmatpush.bf16.msrb.mxu1 %v3927_v4  ;;  %v1984_v63 = vadd.f32 %v1983_v15, %v1970_v32  ;;  %v1997_v43 = vpop.f32.mrf.mxu1  ;;  %2710 = vmatpush.bf16.msrb.mxu2 %v4007_v42  ;;  %v4075_v20 = vor.u32 %v4431_v14, %v4074_v13  ;;  %v4438_v32 = vld [vmem:[#allocation10 + $0x1f4] sm:$0xf] }
 0x15c   :  { %2685 = vmatmul.bf16.vlgmr.msrb.gmra.mxu0 %v4755_v16  ;;  %v1958_v16 = vadd.f32 %v1957_v35, %v1944_v41  ;;  %v1998_v51 = vadd.f32 %v1997_v43, %v1984_v63  ;;  %2667 = vmatpush.bf16.msra.mxu3 %v4075_v20  ;;  %v4108_v35 = vld [vmem:[#allocation10 + $0x1f8] sm:$0xf0]  ;;  %v4100_v41 = vld [vmem:[#allocation10 + $0x1e8] sm:$0xf0]  ;;  %v4434_v63 = vld [vmem:[#allocation10 + $0x1d4] sm:$0xf] }
 0x15d   :  { %2699 = vmatmul.bf16.vlgmr.msrb.gmra.mxu1 %v4759_v25  ;;  %v3999_v25 = vor.u32 %v4410_v47, %v3996_v49  ;;  %v4111_v36 = vor.u32 %v4438_v32, %v4108_v35  ;;  %v4092_v43 = vld [vmem:[#allocation10 + $0x1d8] sm:$0xf0] }
 0x15e   :  { %v1972_v55 = vadd.f32 %v1971_v31, %v1958_v16  ;;  %v4436_v31 = vld [vmem:[#allocation10 + $0x1e4] sm:$0xf]  ;;  %v4095_v47 = vor.u32 %v4434_v63, %v4092_v43 }
 0x15f   :  { %2711 = vmatpush.bf16.msrb.mxu2 %v3999_v25  ;;  %v4103_v15 = vor.u32 %v4436_v31, %v4100_v41  ;;  %v4084_v25 = vld [vmem:[#allocation10 + $0x1c8] sm:$0xf0] }
 0x160   :  { %2668 = vmatpush.bf16.msra.mxu3 %v4067_v58 }
 0x161   :  { %v2011_v19 = vpop.f32.mrf.mxu2  ;;  %v1985_v56 = vpop.f32.mrf.mxu0 }
 0x162   :  { %v2012_v40 = vadd.f32 %v2011_v19, %v1998_v51  ;;  %v2025_v57 = vpop.f32.mrf.mxu3  ;;  %v1986_v45 = vadd.f32 %v1985_v56, %v1972_v55  ;;  %v1999_v60 = vpop.f32.mrf.mxu1  ;;  %v4432_v51 = vld [vmem:[#allocation10 + $0x1c4] sm:$0xf] }
 0x163   :  { %2712 = vmatpush.bf16.msrb.mxu2 %v3991_v2  ;;  %v4087_v33 = vor.u32 %v4432_v51, %v4084_v25  ;;  %v4068_v2 = vld [vmem:[#allocation10 + $0x1a8] sm:$0xf0] }
 0x164   :  { %v2026_v61 = vadd.f32 %v2025_v57, %v2012_v40  ;;  %v2000_v62 = vadd.f32 %v1999_v60, %v1986_v45  ;;  %2669 = vmatpush.bf16.msra.mxu3 %v4059_v26  ;;  %v4079_v40 = vor.u32 %v4430_v53, %v4076_v54  ;;  %v4428_v57 = vld [vmem:[#allocation10 + $0x1a4] sm:$0xf] }
 0x165   :  { %v4071_v45 = vor.u32 %v4428_v57, %v4068_v2  ;;  %v2745_v57 = vld [vmem:[%s4783_s5] sm:$0x3]  ;;  %s4594_s5 = smov [#allocation12]  }
 0x166   :  { %v2181_v5 = vadd.f32 %v2173_v48, %v2026_v61  ;;  %s2783_s27 = sshll.u32 %s4594_s5, 4  ;;  %s2784_s27 = int_to_ptr.vmem [resolvable:$true] %s2783_s27 }
 0x168   :  { %v2197_v4 = vmul.f32 0.2, %v2181_v5  ;;  %vm2189_vm4 = vcmp.gt.f32.partialorder %v2181_v5, 0.0  ;;  %2670 = vmatpush.bf16.msra.mxu3 %v4051_v30 }
 0x169   :  { %v2013_v59 = vpop.f32.mrf.mxu2 }
 0x16a   :  { %v2014_v6 = vadd.f32 %v2013_v59, %v2000_v62  ;;  %v2027_v9 = vpop.f32.mrf.mxu3  ;;  %v2205_v21 = vsel %vm2189_vm4, %v2181_v5, %v2197_v4  ;;  %v4060_v62 = vld [vmem:[#allocation10 + $0x198] sm:$0xf0]  ;;  %v4424_v5 = vld [vmem:[#allocation10 + $0x184] sm:$0xf] }
 0x16b   :  { %v4063_v0 = vor.u32 %v4426_v29, %v4060_v62 }
 0x16c   :  { %v2028_v34 = vadd.f32 %v2027_v9, %v2014_v6  ;;  %2719 = vmatpush.bf16.msrb.mxu3 %v4111_v36  ;;  %v4052_v6 = vld [vmem:[#allocation10 + $0x188] sm:$0xf0]  ;;  %v2295_v36 = vld [vmem:[%s4782_s4] sm:$0x3] }
 0x16d   :  { %v4055_v8 = vor.u32 %v4424_v5, %v4052_v6  ;;  %v2297_v41 = vperm.slane %v2295_v36, 0  ;;  %v2298_v43 = vperm.slane %v2295_v36, 1 }
 0x16e   :  { %v2185_v10 = vadd.f32 %v2173_v48, %v2028_v34 }
 0x170   :  { %vm2193_vm5 = vcmp.gt.f32.partialorder %v2185_v10, 0.0  ;;  %v2201_v17 = vmul.f32 0.2, %v2185_v10  ;;  %2720 = vmatpush.bf16.msrb.mxu3 %v4103_v15 }
 0x172   :  { %v2209_v22 = vsel %vm2193_vm5, %v2185_v10, %v2201_v17  ;;  %v2174_v10 = vperm.slane %v4746_v7, 3 }
 0x173   :  { %v2229_v23 = vpack.c.bf16 %v2209_v22, %v2205_v21 }
 0x174   :  { %2721 = vmatpush.bf16.msrb.mxu3 %v4095_v47 }
 0x175   :  { %2657 = vmatmul.bf16.vlgmr.msra.gmra.mxu2 %v2229_v23 }
 0x178   :  { %2722 = vmatpush.bf16.msrb.mxu3 %v4087_v33 }
 0x179   :  { %v2039_v38 = vpop.f32.mrf.mxu0 }
 0x17a   :  { %v2053_v42 = vpop.f32.mrf.mxu1 }
 0x17b   :  { %v2054_v52 = vadd.f32 %v2053_v42, %v2039_v38 }
 0x17c   :  { %2723 = vmatpush.bf16.msrb.mxu3 %v4079_v40 }
 0x180   :  { %2724 = vmatpush.bf16.msrb.mxu3 %v4071_v45 }
 0x181   :  { %v2067_v49 = vpop.f32.mrf.mxu2  ;;  %v2041_v19 = vpop.f32.mrf.mxu0 }
 0x182   :  { %v2081_v16 = vpop.f32.mrf.mxu3  ;;  %v2055_v55 = vpop.f32.mrf.mxu1  ;;  %v2068_v56 = vadd.f32 %v2067_v49, %v2054_v52 }
 0x183   :  { %v2056_v44 = vadd.f32 %v2055_v55, %v2041_v19 }
 0x184   :  { %v2082_v60 = vadd.f32 %v2081_v16, %v2068_v56  ;;  %2725 = vmatpush.bf16.msrb.mxu3 %v4063_v0 }
 0x185   :  { %2713 = vmatmul.bf16.vlgmr.msrb.gmra.mxu2 %v2229_v23 }
 0x188   :  { %2726 = vmatpush.bf16.msrb.mxu3 %v4055_v8 }
 0x189   :  { %v2069_v1 = vpop.f32.mrf.mxu2 }
 0x18a   :  { %v2083_v18 = vpop.f32.mrf.mxu3  ;;  %v2070_v11 = vadd.f32 %v2069_v1, %v2056_v44  ;;  %v2747_v44 = vperm.slane %v2745_v57, 0 }
 0x18c   :  { %v2084_v12 = vadd.f32 %v2083_v18, %v2070_v11  ;;  %v2748_v18 = vperm.slane %v2745_v57, 1 }
 0x199   :  { %v2095_v61 = vpop.f32.mrf.mxu0 }
 0x19a   :  { %v2096_v48 = vadd.f32 %v2095_v61, %v2082_v60  ;;  %v2109_v59 = vpop.f32.mrf.mxu1 }
 0x19c   :  { %v2110_v3 = vadd.f32 %v2109_v59, %v2096_v48 }
 0x1a1   :  { %v2123_v9 = vpop.f32.mrf.mxu2  ;;  %v2097_v13 = vpop.f32.mrf.mxu0 }
 0x1a2   :  { %v2124_v34 = vadd.f32 %v2123_v9, %v2110_v3  ;;  %v2137_v37 = vpop.f32.mrf.mxu3  ;;  %v2098_v14 = vadd.f32 %v2097_v13, %v2084_v12  ;;  %v2111_v17 = vpop.f32.mrf.mxu1 }
 0x1a4   :  { %v2138_v4 = vadd.f32 %v2137_v37, %v2124_v34  ;;  %v2112_v20 = vadd.f32 %v2111_v17, %v2098_v14 }
 0x1a6   :  { %v2182_v22 = vadd.f32 %v2174_v10, %v2138_v4 }
 0x1a8   :  { %v2198_v58 = vmul.f32 0.2, %v2182_v22  ;;  %vm2190_vm6 = vcmp.gt.f32.partialorder %v2182_v22, 0.0 }
 0x1a9   :  { %v2125_v21 = vpop.f32.mrf.mxu2 }
 0x1aa   :  { %v2126_v23 = vadd.f32 %v2125_v21, %v2112_v20  ;;  %v2139_v46 = vpop.f32.mrf.mxu3  ;;  %v2206_v26 = vsel %vm2190_vm6, %v2182_v22, %v2198_v58  ;;  %v4593_v20 = vmov 0   ;;  %v4454_v21 = vld [vmem:[#allocation3] ss:$0 sm:$0xff] }
 0x1ab   :  { %4452 = vset.pattern.permute.xlu1 %v4593_v20  ;;  %4453 = vset.pattern.permute.xlu0 %v4593_v20 }
 0x1ac   :  { %v2140_v50 = vadd.f32 %v2139_v46, %v2126_v23 }
 0x1ae   :  { %v2186_v39 = vadd.f32 %v2174_v10, %v2140_v50 }
 0x1b0   :  { %vm2194_vm7 = vcmp.gt.f32.partialorder %v2186_v39, 0.0  ;;  %v2202_v24 = vmul.f32 0.2, %v2186_v39 }
 0x1b2   :  { %v2210_v27 = vsel %vm2194_vm7, %v2186_v39, %v2202_v24 }
 0x1b3   :  { %v2230_v28 = vpack.c.bf16 %v2210_v27, %v2206_v26 }
 0x1b5   :  { %2671 = vmatmul.bf16.vlgmr.msra.gmra.mxu3 %v2230_v28 }
 0x1b9   :  { %v2630_v30 = vpop.f32.mrf.mxu0 }
 0x1ba   :  { %v2644_v7 = vpop.f32.mrf.mxu1  ;;  %v2631_v63 = vadd.f32 %v2630_v30, %v2297_v41 }
 0x1bc   :  { %v2645_v47 = vadd.f32 %v2644_v7, %v2631_v63 }
 0x1c1   :  { %v2632_v35 = vpop.f32.mrf.mxu0 }
 0x1c2   :  { %v2646_v15 = vpop.f32.mrf.mxu1  ;;  %v2633_v19 = vadd.f32 %v2632_v35, %v2297_v41 }
 0x1c4   :  { %v2647_v55 = vadd.f32 %v2646_v15, %v2633_v19 }
 0x1c5   :  { %2727 = vmatmul.bf16.vlgmr.msrb.gmra.mxu3 %v2230_v28 }
 0x1d9   :  { %v2686_v42 = vpop.f32.mrf.mxu0 }
 0x1da   :  { %v2687_v16 = vadd.f32 %v2686_v42, %v2298_v43  ;;  %v2700_v25 = vpop.f32.mrf.mxu1 }
 0x1dc   :  { %v2701_v53 = vadd.f32 %v2700_v25, %v2687_v16 }
 0x1e1   :  { %v2688_v54 = vpop.f32.mrf.mxu0 }
 0x1e2   :  { %v2689_v1 = vadd.f32 %v2688_v54, %v2298_v43  ;;  %v2702_v62 = vpop.f32.mrf.mxu1 }
 0x1e4   :  { %v2703_v0 = vadd.f32 %v2702_v62, %v2689_v1 }
 0x1f8   :  { %v2658_v32 = vpop.f32.mrf.mxu2 }
 0x1f9   :  { %v2659_v51 = vadd.f32 %v2658_v32, %v2645_v47 }
 0x200   :  { %v2660_v38 = vpop.f32.mrf.mxu2 }
 0x201   :  { %v2661_v45 = vadd.f32 %v2660_v38, %v2647_v55 }
 0x208   :  { %v2714_v33 = vpop.f32.mrf.mxu2 }
 0x209   :  { %v2715_v40 = vadd.f32 %v2714_v33, %v2701_v53 }
 0x210   :  { %v2716_v59 = vpop.f32.mrf.mxu2 }
 0x211   :  { %v2717_v6 = vadd.f32 %v2716_v59, %v2703_v0 }
 0x238   :  { %v2672_v31 = vpop.f32.mrf.mxu3 }
 0x239   :  { %v2673_v52 = vadd.f32 %v2672_v31, %v2659_v51 }
 0x23b   :  { %v2737_v56 = vmul.f32 0.2, %v2673_v52  ;;  %vm2733_vm8 = vcmp.gt.f32.partialorder %v2673_v52, 0.0 }
 0x23d   :  { %v2741_v29 = vsel %vm2733_vm8, %v2673_v52, %v2737_v56 }
 0x23e   :  { %v2751_v3 = vmul.f32 %v2747_v44, %v2741_v29 }
 0x240   :  { %v2674_v49 = vpop.f32.mrf.mxu3 }
 0x241   :  { %v2675_v61 = vadd.f32 %v2674_v49, %v2661_v45 }
 0x243   :  { %v2739_v9 = vmul.f32 0.2, %v2675_v61  ;;  %vm2735_vm10 = vcmp.gt.f32.partialorder %v2675_v61, 0.0 }
 0x245   :  { %v2743_v13 = vsel %vm2735_vm10, %v2675_v61, %v2739_v9 }
 0x246   :  { %v2753_v4 = vmul.f32 %v2747_v44, %v2743_v13 }
 0x248   :  { %v2728_v2 = vpop.f32.mrf.mxu3 }
 0x249   :  { %v2729_v60 = vadd.f32 %v2728_v2, %v2715_v40 }
 0x24b   :  { %vm2734_vm9 = vcmp.gt.f32.partialorder %v2729_v60, 0.0  ;;  %v2738_v48 = vmul.f32 0.2, %v2729_v60 }
 0x24d   :  { %v2742_v11 = vsel %vm2734_vm9, %v2729_v60, %v2738_v48 }
 0x24e   :  { %v2752_v5 = vmul.f32 %v2748_v18, %v2742_v11 }
 0x250   :  { %v2730_v8 = vpop.f32.mrf.mxu3  ;;  %v2755_v12 = vadd.f32 %v2752_v5, %v2751_v3 }
 0x251   :  { %v2731_v34 = vadd.f32 %v2730_v8, %v2717_v6 }
 0x252   :  { %2756 = vadd.xlane.f32.xlu0 %v2755_v12 }
 0x253   :  { %vm2736_vm11 = vcmp.gt.f32.partialorder %v2731_v34, 0.0  ;;  %v2740_v37 = vmul.f32 0.2, %v2731_v34 }
 0x255   :  { %v2744_v14 = vsel %vm2736_vm11, %v2731_v34, %v2740_v37 }
 0x256   :  { %v2754_v10 = vmul.f32 %v2748_v18, %v2744_v14 }
 0x258   :  { %v2758_v17 = vadd.f32 %v2754_v10, %v2753_v4 }
 0x25a   :  { %2759 = vadd.xlane.f32.xlu0 %v2758_v17 }
 0x2c5   :  { %v2757_v22 = vpop.xlane.xlu0 %2756 }
 0x2c6   :  { %v2765_v23 = vadd.f32 %v4454_v21, %v2757_v22 }
 0x2c8   :  { %2769 = vperm.xlu1 %4452, %v2765_v23  }
 0x2cd   :  { %v2760_v46 = vpop.xlane.xlu0 %2759 }
 0x2ce   :  { %v2766_v50 = vadd.f32 %v4454_v21, %v2760_v46 }
 0x2d0   :  { %2774 = vperm.xlu1 %4452, %v2766_v50  }
 0x33a   :  { %v2770_v58 = vpop.permute.xlu1 %2769 }
 0x33b   :  { %2777 = vst [vmem:[#allocation12] sm:$0xff] %v2770_v58 }
 0x342   :  { %v2775_v39 = vpop.permute.xlu1 %2774 }
 0x343   :  { %2778 = vst [vmem:[#allocation12 + $0x8] sm:$0xff] %v2775_v39 }
 0x344   :  { %2791 = dma.vmem_to_hbm [thread:$0]  %s2784_s27, 256, %s2786_s30, [#allocation6], %s4591_s24, %s4591_s24, %s4592_s25  }
 0x345   :  { %4581 = dma.done.wait [#allocation6], 256  }
 0x346   :  { %4582 = vsyncadd [#allocation6], 4294967040 }
 0x347   :  { %2796 = vsyncpa [#allocation5], 1 }
 0x348   :  { %2797 = vsyncpa [#allocation8], 1 }
 0x349   :  { %2798 = vsyncpa [#allocation11], 1 }
 0x34a   :  { %2799 = vsyncpa [#allocation6], 1 }

</bundles_post_ra>
